<compile_context>
chip_gen: v7x
topology: tpu7x:2x2x1
jax: 0.10.0
libtpu: 0.0.40
codegen_flags: <defaults>
</compile_context>

<pallas_src>
import functools

import jax
import jax.numpy as jnp
from jax.experimental import pallas as pl
from jax.experimental.pallas import tpu as pltpu


# --------------------------------------------------------------------------------------
# pltpu.roll direction probe (run once, eagerly).  +1: pltpu.roll == jnp.roll; -1: it is
# the inverse rotation; 0: probe unavailable (e.g. called under tracing) -> fall back to
# jnp.roll's slice+concat lowering, which is always correct.
# --------------------------------------------------------------------------------------

_ROLL_SIGN_CACHE = []


def _pltpu_roll_sign():
    if _ROLL_SIGN_CACHE:
        return _ROLL_SIGN_CACHE[0]
    sign = 0
    try:
        def _probe(x_ref, o_ref):
            o_ref[...] = pltpu.roll(x_ref[...], 1, axis=1)

        x = jnp.arange(8 * 128, dtype=jnp.float32).reshape(8, 128)
        out = pl.pallas_call(
            _probe, out_shape=jax.ShapeDtypeStruct((8, 128), jnp.float32))(x)
        if bool(jnp.array_equal(out, jnp.roll(x, 1, axis=1))):
            sign = 1
        elif bool(jnp.array_equal(out, jnp.roll(x, -1, axis=1))):
            sign = -1
    except Exception:
        sign = 0
    _ROLL_SIGN_CACHE.append(sign)
    return sign


def _roll_read(x, s, length, roll_sign):
    """result[:, p] = x[:, (p + s) % length] for a static shift s (any sign)."""
    if s % length == 0:
        return x
    if roll_sign == 0:
        return jnp.roll(x, -s, axis=1)                      # slice+concat fallback
    return pltpu.roll(x, (-roll_sign * s) % length, axis=1)  # XLU lane rotate


# --------------------------------------------------------------------------------------
# Fused EncoderConvBlock kernel: all layers, BN batch stats + apply, activation, maxpool.
# --------------------------------------------------------------------------------------

def encoder_block_kernel(x_ref, wb_ref, wa_ref, g_ref, b_ref, mask_ref, o_ref, *,
                         n_layers, n_img, ls, wp, eps, slope, do_pool, inv_count,
                         roll_sign):
    total = n_img * ls
    tap_shifts = tuple((kh - 1) * wp + (kw - 1) for kh in range(3) for kw in range(3))

    # Validity mask (1, total): broadcast the single-image (1, ls) mask across the batch
    # in VMEM (no per-image mask stream from HBM).
    m1 = mask_ref[...]
    mask = m1 if n_img == 1 else jnp.concatenate([m1] * n_img, axis=1)

    cur = x_ref[...]                                   # (Cin, total), zero pad ring
    y = cur
    for layer in range(n_layers):
        # layer 0 -> base_conv weights; every later layer reuses the SAME additional_conv
        # weights and the same BatchNorm parameters (matching the PyTorch module).
        w2 = wb_ref[...] if layer == 0 else wa_ref[...]          # (Cout, 9*Cin_l)

        # 9 shifted tap views built in VMEM via XLU lane rotates, one (Cout, 9*Cin_l) x
        # (9*Cin_l, total) MXU matmul.
        # TODO(synk): for large Cin split into 3 row-group (or 9 per-tap) matmuls
        # accumulated in an f32 scratch instead of materializing the 9x xcol buffer.
        taps = [_roll_read(cur, s, total, roll_sign) for s in tap_shifts]
        xcol = jnp.concatenate(taps, axis=0)                     # (9*Cin_l, total)
        acc = jnp.dot(w2, xcol, preferred_element_type=jnp.float32)   # (Cout, total)

        # Train-mode BatchNorm over valid positions only, folded into one FMA
        # (y = acc * s_bn + t_bn), computed once per layer on (Cout, 1) values.
        # The conv bias is dropped: batch-mean subtraction cancels it exactly.
        am = acc * mask
        mean = jnp.sum(am, axis=1, keepdims=True) * inv_count
        var = jnp.maximum(
            jnp.sum(am * acc, axis=1, keepdims=True) * inv_count - mean * mean, 0.0)
        s_bn = g_ref[...] * jax.lax.rsqrt(var + eps)
        t_bn = b_ref[...] - s_bn * mean
        y = acc * s_bn + t_bn

        last = layer == n_layers - 1
        a = slope if last else 0.0         # ReLU for inner layers, LeakyReLU on the last
        y = jnp.where(y >= 0.0, y, a * y)

        if not last:
            cur = y * mask                 # re-zero pad ring before the next conv layer

    if do_pool:
        # Fused 2x2/stride-2 maxpool: each window's max lands on the window's top-left
        # flat position (all four window members are valid positions); the wrapper
        # gathers exactly those positions afterwards.
        y = jnp.maximum(
            jnp.maximum(y, _roll_read(y, 1, total, roll_sign)),
            jnp.maximum(_roll_read(y, wp, total, roll_sign),
                        _roll_read(y, wp + 1, total, roll_sign)))
    o_ref[...] = y


# --------------------------------------------------------------------------------------
# EncoderConvBlock forward (NCHW in, NCHW out)
# --------------------------------------------------------------------------------------

def encoder_conv_block(x_nchw, params, *, kernel, slope, pool=True, eps=1e-5):
    n_layers = int(kernel // 2)
    n, cin, h, w = x_nchw.shape
    cout = params["base_w"].shape[0]
    hp, wp = h + 2, w + 2
    ls = ((hp * wp + 127) // 128) * 128       # per-image lane stride (lane-dense)
    total = n * ls

    # Whole-block-in-VMEM fusion budget (comfortable on v7x's 64 MiB as well).
    vmem_est = 4 * total * (cin + 2 * cout + 18 * max(cin, cout) + 2)
    assert vmem_est < 48 * 1024 * 1024, (
        "TODO(synk): feature map does not fit VMEM; fall back to the tiled two-pass "
        "(conv+stats accumulator / BN-apply) variant with a batch/row grid.")

    # XLA prologue: pad ring + NCHW -> planar (Cin, N*Ls).  Single fused read+write of
    # the small input; folding it into the kernel would need an in-kernel relayout of
    # non-128-aligned spatial dims.
    xp = jnp.pad(x_nchw, ((0, 0), (0, 0), (1, 1), (1, 1)))          # (N, Cin, Hp, Wp)
    xp = jnp.transpose(xp, (1, 0, 2, 3)).reshape(cin, n, hp * wp)
    x_flat = jnp.pad(xp, ((0, 0), (0, 0), (0, ls - hp * wp))).reshape(cin, total)

    # Single-image validity mask (1, Ls): 1.0 inside the HxW interior of the padded map.
    mask1 = jnp.pad(jnp.ones((h, w), jnp.float32), ((1, 1), (1, 1))).reshape(-1)
    mask1 = jnp.pad(mask1, (0, ls - hp * wp)).reshape(1, ls)

    # (Cout, Cin, 3, 3) -> (Cout, 9*Cin), tap-major (kh, kw, ci) to match xcol rows.
    wb2 = jnp.transpose(params["base_w"], (0, 2, 3, 1)).reshape(cout, -1)
    wa2 = jnp.transpose(params["add_w"], (0, 2, 3, 1)).reshape(cout, -1)
    gamma = params["gamma"].reshape(cout, 1).astype(jnp.float32)
    beta = params["beta"].reshape(cout, 1).astype(jnp.float32)
    # NOTE: conv biases (base_b / add_b) are intentionally dropped - train-mode BN
    # subtracts the batch mean, cancelling a constant per-channel bias exactly.

    flops, c_prev = 0, cin
    for _ in range(n_layers):
        flops += 2 * cout * 9 * c_prev * total
        c_prev = cout
    cost = pl.CostEstimate(
        flops=int(flops),
        transcendentals=int(n_layers * cout),
        bytes_accessed=int(4 * (cin * total + cout * total
                                + wb2.size + wa2.size + 2 * cout + ls)))

    out = pl.pallas_call(
        functools.partial(
            encoder_block_kernel,
            n_layers=n_layers, n_img=n, ls=ls, wp=wp, eps=float(eps),
            slope=float(slope), do_pool=bool(pool),
            inv_count=1.0 / float(n * h * w), roll_sign=_pltpu_roll_sign()),
        in_specs=[pl.BlockSpec(memory_space=pltpu.MemorySpace.VMEM)] * 6,
        out_specs=pl.BlockSpec(memory_space=pltpu.MemorySpace.VMEM),
        out_shape=jax.ShapeDtypeStruct((cout, total), jnp.float32),
        cost_estimate=cost,
    )(x_flat, wb2, wa2, gamma, beta, mask1)

    # Tiny XLA epilogue: gather valid / pooled positions and restore NCHW.
    y = out.reshape(cout, n, ls)[:, :, :hp * wp].reshape(cout, n, hp, wp)
    if pool:
        # The fused in-kernel max left each 2x2 window's max at its top-left position.
        y = y[:, :, 1:1 + h:2, 1:1 + w:2]
        # TODO(synk): compacting the pooled map inside the kernel (strided lane gather)
        # would remove this XLA strided-slice/relayout pass; left to XLA here.
    else:
        y = y[:, :, 1:1 + h, 1:1 + w]
    return jnp.transpose(y, (1, 0, 2, 3))        # (N, Cout, H', W')
    # TODO(synk): BatchNorm running_mean/running_var tracking is a training-time side
    # effect that does not affect the train-mode forward output; not reproduced here.


# --------------------------------------------------------------------------------------
# Pure-JAX reference (faithful to the PyTorch module, including the conv bias)
# --------------------------------------------------------------------------------------

def reference(x_nchw, params, *, kernel, slope, pool=True, eps=1e-5):
    n_layers = int(kernel // 2)
    x = x_nchw
    for layer in range(n_layers):
        if layer == 0:
            w, b = params["base_w"], params["base_b"]
        else:
            w, b = params["add_w"], params["add_b"]
        x = jax.lax.conv_general_dilated(
            x, w, window_strides=(1, 1), padding=((1, 1), (1, 1)),
            dimension_numbers=("NCHW", "OIHW", "NCHW")) + b[None, :, None, None]
        mean = jnp.mean(x, axis=(0, 2, 3), keepdims=True)
        var = jnp.mean((x - mean) ** 2, axis=(0, 2, 3), keepdims=True)
        x = (params["gamma"][None, :, None, None] * (x - mean)
             / jnp.sqrt(var + eps) + params["beta"][None, :, None, None])
        s = slope if layer == n_layers - 1 else 0.0
        x = jnp.where(x >= 0, x, s * x)
    if pool:
        x = jax.lax.reduce_window(x, -jnp.inf, jax.lax.max,
                                  (1, 1, 2, 2), (1, 1, 2, 2), "VALID")
    return x


# --------------------------------------------------------------------------------------
# Main
# --------------------------------------------------------------------------------------

if __name__ == "__main__":
    # EncoderConvBlock(kernel=5, in_dim=4, out_dim=8, slope=0.1, pool=True) -> 2 layers
    KERNEL, IN_DIM, OUT_DIM, SLOPE, POOL = 5, 4, 8, 0.1, True

    key = jax.random.PRNGKey(0)
    k1, k2, k3, k4, k5, k6, kx = jax.random.split(key, 7)
    params = {
        "base_w": 0.2 * jax.random.normal(k1, (OUT_DIM, IN_DIM, 3, 3), jnp.float32),
        "base_b": 0.1 * jax.random.normal(k2, (OUT_DIM,), jnp.float32),  # cancelled by BN
        "add_w": 0.2 * jax.random.normal(k3, (OUT_DIM, OUT_DIM, 3, 3), jnp.float32),
        "add_b": 0.1 * jax.random.normal(k4, (OUT_DIM,), jnp.float32),   # cancelled by BN
        "gamma": 1.0 + 0.1 * jax.random.normal(k5, (OUT_DIM,), jnp.float32),
        "beta": 0.1 * jax.random.normal(k6, (OUT_DIM,), jnp.float32),
    }
    x = jax.random.normal(kx, (2, IN_DIM, 16, 16), jnp.float32)  # NCHW like PyTorch

    _pltpu_roll_sign()   # eager probe so the jitted kernel can take the XLU rotate path

    fwd = jax.jit(functools.partial(encoder_conv_block,
                                    kernel=KERNEL, slope=SLOPE, pool=POOL))
    out = jax.block_until_ready(fwd(x, params))

    ref = jax.block_until_ready(
        reference(x, params, kernel=KERNEL, slope=SLOPE, pool=POOL))

    assert out.shape == ref.shape == (2, OUT_DIM, 8, 8), (out.shape, ref.shape)
    assert bool(jnp.allclose(out, ref, atol=2e-4, rtol=2e-4)), (
        "mismatch vs reference: max abs err = "
        f"{float(jnp.max(jnp.abs(out - ref)))}")
    print("KERNEL_OK")
</pallas_src>

<mosaic_0001>
module attributes {stable_mosaic.version = 11 : i64} {
  func.func @_probe(%arg0: memref<8x128xf32, #tpu.memory_space<vmem>>, %arg1: memref<8x128xf32, #tpu.memory_space<vmem>>) attributes {dimension_semantics = [], scalar_prefetch = 0 : i64, scratch_operands = 0 : i64, tpu.core_type = #tpu.core_type<tc>} {
    %c0 = arith.constant 0 : index
    %c0_0 = arith.constant 0 : index
    %0 = vector.load %arg0[%c0, %c0_0] : memref<8x128xf32, #tpu.memory_space<vmem>>, vector<8x128xf32>
    %c1_i32 = arith.constant 1 : i32
    %1 = tpu.dynamic_rotate %0 by %c1_i32 dim 1 : vector<8x128xf32>, i32 -> vector<8x128xf32>
    %c0_1 = arith.constant 0 : index
    %c0_2 = arith.constant 0 : index
    %2 = vector.load %arg1[%c0_1, %c0_2] : memref<8x128xf32, #tpu.memory_space<vmem>>, vector<8x128xf32>
    tpu.vector_store %arg1[%c0_1, %c0_2], %1 {strides = array<i32>} : memref<8x128xf32, #tpu.memory_space<vmem>>, vector<8x128xf32>,
    return
  }
}

module attributes {stable_mosaic.version = 11 : i64} {
  func.func @encoder_block_kernel(%arg0: memref<4x768xf32, #tpu.memory_space<vmem>>, %arg1: memref<8x36xf32, #tpu.memory_space<vmem>>, %arg2: memref<8x72xf32, #tpu.memory_space<vmem>>, %arg3: memref<8x1xf32, #tpu.memory_space<vmem>>, %arg4: memref<8x1xf32, #tpu.memory_space<vmem>>, %arg5: memref<1x384xf32, #tpu.memory_space<vmem>>, %arg6: memref<8x768xf32, #tpu.memory_space<vmem>>) attributes {dimension_semantics = [], scalar_prefetch = 0 : i64, scratch_operands = 0 : i64, tpu.core_type = #tpu.core_type<tc>} {
    %c0 = arith.constant 0 : index
    %c0_0 = arith.constant 0 : index
    %0 = vector.load %arg5[%c0, %c0_0] : memref<1x384xf32, #tpu.memory_space<vmem>>, vector<1x384xf32>
    %1 = tpu.concatenate %0, %0 in 1 : vector<1x384xf32>, vector<1x384xf32> -> vector<1x768xf32>
    %c0_1 = arith.constant 0 : index
    %c0_2 = arith.constant 0 : index
    %2 = vector.load %arg0[%c0_1, %c0_2] : memref<4x768xf32, #tpu.memory_space<vmem>>, vector<4x768xf32>
    %c0_3 = arith.constant 0 : index
    %c0_4 = arith.constant 0 : index
    %3 = vector.load %arg1[%c0_3, %c0_4] : memref<8x36xf32, #tpu.memory_space<vmem>>, vector<8x36xf32>
    %4 = vector.extract_strided_slice %2 {offsets = [0, 749], sizes = [4, 19], strides = [1, 1]} : vector<4x768xf32> to vector<4x19xf32>
    %5 = vector.extract_strided_slice %2 {offsets = [0, 0], sizes = [4, 749], strides = [1, 1]} : vector<4x768xf32> to vector<4x749xf32>
    %6 = tpu.concatenate %4, %5 in 1 : vector<4x19xf32>, vector<4x749xf32> -> vector<4x768xf32>
    %7 = vector.extract_strided_slice %2 {offsets = [0, 750], sizes = [4, 18], strides = [1, 1]} : vector<4x768xf32> to vector<4x18xf32>
    %8 = vector.extract_strided_slice %2 {offsets = [0, 0], sizes = [4, 750], strides = [1, 1]} : vector<4x768xf32> to vector<4x750xf32>
    %9 = tpu.concatenate %7, %8 in 1 : vector<4x18xf32>, vector<4x750xf32> -> vector<4x768xf32>
    %10 = vector.extract_strided_slice %2 {offsets = [0, 751], sizes = [4, 17], strides = [1, 1]} : vector<4x768xf32> to vector<4x17xf32>
    %11 = vector.extract_strided_slice %2 {offsets = [0, 0], sizes = [4, 751], strides = [1, 1]} : vector<4x768xf32> to vector<4x751xf32>
    %12 = tpu.concatenate %10, %11 in 1 : vector<4x17xf32>, vector<4x751xf32> -> vector<4x768xf32>
    %13 = vector.extract_strided_slice %2 {offsets = [0, 767], sizes = [4, 1], strides = [1, 1]} : vector<4x768xf32> to vector<4x1xf32>
    %14 = vector.extract_strided_slice %2 {offsets = [0, 0], sizes = [4, 767], strides = [1, 1]} : vector<4x768xf32> to vector<4x767xf32>
    %15 = tpu.concatenate %13, %14 in 1 : vector<4x1xf32>, vector<4x767xf32> -> vector<4x768xf32>
    %16 = vector.extract_strided_slice %2 {offsets = [0, 1], sizes = [4, 767], strides = [1, 1]} : vector<4x768xf32> to vector<4x767xf32>
    %17 = vector.extract_strided_slice %2 {offsets = [0, 0], sizes = [4, 1], strides = [1, 1]} : vector<4x768xf32> to vector<4x1xf32>
    %18 = tpu.concatenate %16, %17 in 1 : vector<4x767xf32>, vector<4x1xf32> -> vector<4x768xf32>
    %19 = vector.extract_strided_slice %2 {offsets = [0, 17], sizes = [4, 751], strides = [1, 1]} : vector<4x768xf32> to vector<4x751xf32>
    %20 = vector.extract_strided_slice %2 {offsets = [0, 0], sizes = [4, 17], strides = [1, 1]} : vector<4x768xf32> to vector<4x17xf32>
    %21 = tpu.concatenate %19, %20 in 1 : vector<4x751xf32>, vector<4x17xf32> -> vector<4x768xf32>
    %22 = vector.extract_strided_slice %2 {offsets = [0, 18], sizes = [4, 750], strides = [1, 1]} : vector<4x768xf32> to vector<4x750xf32>
    %23 = vector.extract_strided_slice %2 {offsets = [0, 0], sizes = [4, 18], strides = [1, 1]} : vector<4x768xf32> to vector<4x18xf32>
    %24 = tpu.concatenate %22, %23 in 1 : vector<4x750xf32>, vector<4x18xf32> -> vector<4x768xf32>
    %25 = vector.extract_strided_slice %2 {offsets = [0, 19], sizes = [4, 749], strides = [1, 1]} : vector<4x768xf32> to vector<4x749xf32>
    %26 = vector.extract_strided_slice %2 {offsets = [0, 0], sizes = [4, 19], strides = [1, 1]} : vector<4x768xf32> to vector<4x19xf32>
    %27 = tpu.concatenate %25, %26 in 1 : vector<4x749xf32>, vector<4x19xf32> -> vector<4x768xf32>
    %28 = tpu.concatenate %6, %9, %12, %15, %2, %18, %21, %24, %27 in 0 : vector<4x768xf32>, vector<4x768xf32>, vector<4x768xf32>, vector<4x768xf32>, vector<4x768xf32>, vector<4x768xf32>, vector<4x768xf32>, vector<4x768xf32>, vector<4x768xf32> -> vector<36x768xf32>
    %cst = arith.constant dense<0.000000e+00> : vector<8x768xf32>
    %29 = tpu.matmul %3, %28, %cst {dimension_numbers = #tpu.dot_dimension_numbers<[1], [0], [0], [1], [0, 0, 1, 1], [], []>} : vector<8x36xf32>, vector<36x768xf32>, vector<8x768xf32> -> vector<8x768xf32>
    %30 = vector.broadcast %1 : vector<1x768xf32> to vector<8x768xf32>
    %31 = arith.mulf %29, %30 : vector<8x768xf32>
    %cst_5 = arith.constant dense<0.000000e+00> : vector<8xf32>
    %32 = vector.multi_reduction <add>, %31, %cst_5 [1] : vector<8x768xf32> to vector<8xf32>
    %33 = vector.shape_cast %32 : vector<8xf32> to vector<8x1xf32>
    %cst_6 = arith.constant 0.001953125 : f32
    %34 = vector.broadcast %cst_6 : f32 to vector<8x1xf32>
    %35 = arith.mulf %33, %34 : vector<8x1xf32>
    %36 = arith.mulf %31, %29 : vector<8x768xf32>
    %cst_7 = arith.constant dense<0.000000e+00> : vector<8xf32>
    %37 = vector.multi_reduction <add>, %36, %cst_7 [1] : vector<8x768xf32> to vector<8xf32>
    %38 = vector.shape_cast %37 : vector<8xf32> to vector<8x1xf32>
    %cst_8 = arith.constant 0.001953125 : f32
    %39 = vector.broadcast %cst_8 : f32 to vector<8x1xf32>
    %40 = arith.mulf %38, %39 : vector<8x1xf32>
    %41 = arith.mulf %35, %35 : vector<8x1xf32>
    %42 = arith.subf %40, %41 : vector<8x1xf32>
    %cst_9 = arith.constant 0.000000e+00 : f32
    %43 = vector.broadcast %cst_9 : f32 to vector<8x1xf32>
    %44 = arith.maximumf %42, %43 : vector<8x1xf32>
    %c0_10 = arith.constant 0 : index
    %c0_11 = arith.constant 0 : index
    %45 = vector.load %arg3[%c0_10, %c0_11] : memref<8x1xf32, #tpu.memory_space<vmem>>, vector<8x1xf32>
    %cst_12 = arith.constant 9.99999974E-6 : f32
    %46 = vector.broadcast %cst_12 : f32 to vector<8x1xf32>
    %47 = arith.addf %44, %46 : vector<8x1xf32>
    %48 = math.rsqrt %47 : vector<8x1xf32>
    %49 = arith.mulf %45, %48 : vector<8x1xf32>
    %c0_13 = arith.constant 0 : index
    %c0_14 = arith.constant 0 : index
    %50 = vector.load %arg4[%c0_13, %c0_14] : memref<8x1xf32, #tpu.memory_space<vmem>>, vector<8x1xf32>
    %51 = arith.mulf %49, %35 : vector<8x1xf32>
    %52 = arith.subf %50, %51 : vector<8x1xf32>
    %53 = vector.broadcast %49 : vector<8x1xf32> to vector<8x768xf32>
    %54 = arith.mulf %29, %53 : vector<8x768xf32>
    %55 = vector.broadcast %52 : vector<8x1xf32> to vector<8x768xf32>
    %56 = arith.addf %54, %55 : vector<8x768xf32>
    %cst_15 = arith.constant 0.000000e+00 : f32
    %57 = vector.broadcast %cst_15 : f32 to vector<8x768xf32>
    %58 = arith.cmpf oge, %56, %57 : vector<8x768xf32>
    %cst_16 = arith.constant 0.000000e+00 : f32
    %59 = vector.broadcast %cst_16 : f32 to vector<8x768xf32>
    %60 = arith.mulf %59, %56 : vector<8x768xf32>
    %61 = arith.select %58, %56, %60 : vector<8x768xi1>, vector<8x768xf32>
    %62 = vector.broadcast %1 : vector<1x768xf32> to vector<8x768xf32>
    %63 = arith.mulf %61, %62 : vector<8x768xf32>
    %c0_17 = arith.constant 0 : index
    %c0_18 = arith.constant 0 : index
    %64 = vector.load %arg2[%c0_17, %c0_18] : memref<8x72xf32, #tpu.memory_space<vmem>>, vector<8x72xf32>
    %65 = vector.extract_strided_slice %63 {offsets = [0, 749], sizes = [8, 19], strides = [1, 1]} : vector<8x768xf32> to vector<8x19xf32>
    %66 = vector.extract_strided_slice %63 {offsets = [0, 0], sizes = [8, 749], strides = [1, 1]} : vector<8x768xf32> to vector<8x749xf32>
    %67 = tpu.concatenate %65, %66 in 1 : vector<8x19xf32>, vector<8x749xf32> -> vector<8x768xf32>
    %68 = vector.extract_strided_slice %63 {offsets = [0, 750], sizes = [8, 18], strides = [1, 1]} : vector<8x768xf32> to vector<8x18xf32>
    %69 = vector.extract_strided_slice %63 {offsets = [0, 0], sizes = [8, 750], strides = [1, 1]} : vector<8x768xf32> to vector<8x750xf32>
    %70 = tpu.concatenate %68, %69 in 1 : vector<8x18xf32>, vector<8x750xf32> -> vector<8x768xf32>
    %71 = vector.extract_strided_slice %63 {offsets = [0, 751], sizes = [8, 17], strides = [1, 1]} : vector<8x768xf32> to vector<8x17xf32>
    %72 = vector.extract_strided_slice %63 {offsets = [0, 0], sizes = [8, 751], strides = [1, 1]} : vector<8x768xf32> to vector<8x751xf32>
    %73 = tpu.concatenate %71, %72 in 1 : vector<8x17xf32>, vector<8x751xf32> -> vector<8x768xf32>
    %74 = vector.extract_strided_slice %63 {offsets = [0, 767], sizes = [8, 1], strides = [1, 1]} : vector<8x768xf32> to vector<8x1xf32>
    %75 = vector.extract_strided_slice %63 {offsets = [0, 0], sizes = [8, 767], strides = [1, 1]} : vector<8x768xf32> to vector<8x767xf32>
    %76 = tpu.concatenate %74, %75 in 1 : vector<8x1xf32>, vector<8x767xf32> -> vector<8x768xf32>
    %77 = vector.extract_strided_slice %63 {offsets = [0, 1], sizes = [8, 767], strides = [1, 1]} : vector<8x768xf32> to vector<8x767xf32>
    %78 = vector.extract_strided_slice %63 {offsets = [0, 0], sizes = [8, 1], strides = [1, 1]} : vector<8x768xf32> to vector<8x1xf32>
    %79 = tpu.concatenate %77, %78 in 1 : vector<8x767xf32>, vector<8x1xf32> -> vector<8x768xf32>
    %80 = vector.extract_strided_slice %63 {offsets = [0, 17], sizes = [8, 751], strides = [1, 1]} : vector<8x768xf32> to vector<8x751xf32>
    %81 = vector.extract_strided_slice %63 {offsets = [0, 0], sizes = [8, 17], strides = [1, 1]} : vector<8x768xf32> to vector<8x17xf32>
    %82 = tpu.concatenate %80, %81 in 1 : vector<8x751xf32>, vector<8x17xf32> -> vector<8x768xf32>
    %83 = vector.extract_strided_slice %63 {offsets = [0, 18], sizes = [8, 750], strides = [1, 1]} : vector<8x768xf32> to vector<8x750xf32>
    %84 = vector.extract_strided_slice %63 {offsets = [0, 0], sizes = [8, 18], strides = [1, 1]} : vector<8x768xf32> to vector<8x18xf32>
    %85 = tpu.concatenate %83, %84 in 1 : vector<8x750xf32>, vector<8x18xf32> -> vector<8x768xf32>
    %86 = vector.extract_strided_slice %63 {offsets = [0, 19], sizes = [8, 749], strides = [1, 1]} : vector<8x768xf32> to vector<8x749xf32>
    %87 = vector.extract_strided_slice %63 {offsets = [0, 0], sizes = [8, 19], strides = [1, 1]} : vector<8x768xf32> to vector<8x19xf32>
    %88 = tpu.concatenate %86, %87 in 1 : vector<8x749xf32>, vector<8x19xf32> -> vector<8x768xf32>
    %89 = tpu.concatenate %67, %70, %73, %76, %63, %79, %82, %85, %88 in 0 : vector<8x768xf32>, vector<8x768xf32>, vector<8x768xf32>, vector<8x768xf32>, vector<8x768xf32>, vector<8x768xf32>, vector<8x768xf32>, vector<8x768xf32>, vector<8x768xf32> -> vector<72x768xf32>
    %cst_19 = arith.constant dense<0.000000e+00> : vector<8x768xf32>
    %90 = tpu.matmul %64, %89, %cst_19 {dimension_numbers = #tpu.dot_dimension_numbers<[1], [0], [0], [1], [0, 0, 1, 1], [], []>} : vector<8x72xf32>, vector<72x768xf32>, vector<8x768xf32> -> vector<8x768xf32>
    %91 = vector.broadcast %1 : vector<1x768xf32> to vector<8x768xf32>
    %92 = arith.mulf %90, %91 : vector<8x768xf32>
    %cst_20 = arith.constant dense<0.000000e+00> : vector<8xf32>
    %93 = vector.multi_reduction <add>, %92, %cst_20 [1] : vector<8x768xf32> to vector<8xf32>
    %94 = vector.shape_cast %93 : vector<8xf32> to vector<8x1xf32>
    %cst_21 = arith.constant 0.001953125 : f32
    %95 = vector.broadcast %cst_21 : f32 to vector<8x1xf32>
    %96 = arith.mulf %94, %95 : vector<8x1xf32>
    %97 = arith.mulf %92, %90 : vector<8x768xf32>
    %cst_22 = arith.constant dense<0.000000e+00> : vector<8xf32>
    %98 = vector.multi_reduction <add>, %97, %cst_22 [1] : vector<8x768xf32> to vector<8xf32>
    %99 = vector.shape_cast %98 : vector<8xf32> to vector<8x1xf32>
    %cst_23 = arith.constant 0.001953125 : f32
    %100 = vector.broadcast %cst_23 : f32 to vector<8x1xf32>
    %101 = arith.mulf %99, %100 : vector<8x1xf32>
    %102 = arith.mulf %96, %96 : vector<8x1xf32>
    %103 = arith.subf %101, %102 : vector<8x1xf32>
    %cst_24 = arith.constant 0.000000e+00 : f32
    %104 = vector.broadcast %cst_24 : f32 to vector<8x1xf32>
    %105 = arith.maximumf %103, %104 : vector<8x1xf32>
    %c0_25 = arith.constant 0 : index
    %c0_26 = arith.constant 0 : index
    %106 = vector.load %arg3[%c0_25, %c0_26] : memref<8x1xf32, #tpu.memory_space<vmem>>, vector<8x1xf32>
    %cst_27 = arith.constant 9.99999974E-6 : f32
    %107 = vector.broadcast %cst_27 : f32 to vector<8x1xf32>
    %108 = arith.addf %105, %107 : vector<8x1xf32>
    %109 = math.rsqrt %108 : vector<8x1xf32>
    %110 = arith.mulf %106, %109 : vector<8x1xf32>
    %c0_28 = arith.constant 0 : index
    %c0_29 = arith.constant 0 : index
    %111 = vector.load %arg4[%c0_28, %c0_29] : memref<8x1xf32, #tpu.memory_space<vmem>>, vector<8x1xf32>
    %112 = arith.mulf %110, %96 : vector<8x1xf32>
    %113 = arith.subf %111, %112 : vector<8x1xf32>
    %114 = vector.broadcast %110 : vector<8x1xf32> to vector<8x768xf32>
    %115 = arith.mulf %90, %114 : vector<8x768xf32>
    %116 = vector.broadcast %113 : vector<8x1xf32> to vector<8x768xf32>
    %117 = arith.addf %115, %116 : vector<8x768xf32>
    %cst_30 = arith.constant 0.000000e+00 : f32
    %118 = vector.broadcast %cst_30 : f32 to vector<8x768xf32>
    %119 = arith.cmpf oge, %117, %118 : vector<8x768xf32>
    %cst_31 = arith.constant 1.000000e-01 : f32
    %120 = vector.broadcast %cst_31 : f32 to vector<8x768xf32>
    %121 = arith.mulf %120, %117 : vector<8x768xf32>
    %122 = arith.select %119, %117, %121 : vector<8x768xi1>, vector<8x768xf32>
    %123 = vector.extract_strided_slice %122 {offsets = [0, 1], sizes = [8, 767], strides = [1, 1]} : vector<8x768xf32> to vector<8x767xf32>
    %124 = vector.extract_strided_slice %122 {offsets = [0, 0], sizes = [8, 1], strides = [1, 1]} : vector<8x768xf32> to vector<8x1xf32>
    %125 = tpu.concatenate %123, %124 in 1 : vector<8x767xf32>, vector<8x1xf32> -> vector<8x768xf32>
    %126 = arith.maximumf %122, %125 : vector<8x768xf32>
    %127 = vector.extract_strided_slice %122 {offsets = [0, 18], sizes = [8, 750], strides = [1, 1]} : vector<8x768xf32> to vector<8x750xf32>
    %128 = vector.extract_strided_slice %122 {offsets = [0, 0], sizes = [8, 18], strides = [1, 1]} : vector<8x768xf32> to vector<8x18xf32>
    %129 = tpu.concatenate %127, %128 in 1 : vector<8x750xf32>, vector<8x18xf32> -> vector<8x768xf32>
    %130 = vector.extract_strided_slice %122 {offsets = [0, 19], sizes = [8, 749], strides = [1, 1]} : vector<8x768xf32> to vector<8x749xf32>
    %131 = vector.extract_strided_slice %122 {offsets = [0, 0], sizes = [8, 19], strides = [1, 1]} : vector<8x768xf32> to vector<8x19xf32>
    %132 = tpu.concatenate %130, %131 in 1 : vector<8x749xf32>, vector<8x19xf32> -> vector<8x768xf32>
    %133 = arith.maximumf %129, %132 : vector<8x768xf32>
    %134 = arith.maximumf %126, %133 : vector<8x768xf32>
    %c0_32 = arith.constant 0 : index
    %c0_33 = arith.constant 0 : index
    %135 = vector.load %arg6[%c0_32, %c0_33] : memref<8x768xf32, #tpu.memory_space<vmem>>, vector<8x768xf32>
    tpu.vector_store %arg6[%c0_32, %c0_33], %134 {strides = array<i32>} : memref<8x768xf32, #tpu.memory_space<vmem>>, vector<8x768xf32>,
    return
  }
}

</mosaic_0001>

<bundles_post_ra>
// kernel: tpu_custom_call.1
= control target key start
LH: loop header
LB: loop body
LE: loop exit
PB: predicated region body
PF: predicated region fallthrough
CT: control target
= control target key end

     0   :  { %6 = vsyncpa [#allocation3], 0  ;;  %s128_s0 = inlined_call_operand.hbm [shape: f32[8,128], index: 0, kind: input, shape index: {}]   ;;  %s129_s1 = inlined_call_operand.hbm [shape: f32[8,128], index: 1, kind: output, shape index: {}]  }
   0x1   :  { %7 = vsyncpa [#allocation4], 0  ;;  %s91_s6 = smov [#allocation2]   ;;  %s43_s10 = scalar_lea.hbm %s128_s0, 128 }
   0x2   :  { %s14_s7 = sshll.u32 %s91_s6, 4  ;;  %p44_p0 = scmp.ne.s32.totalorder %s128_s0, %s43_s10  ;;  %s15_s7 = int_to_ptr.vmem [resolvable:$true] %s14_s7 }
   0x3   :  { %p47_p1 = scmp.lt.u32.totalorder %s43_s10, %s128_s0 }
   0x5   :  { %p49_p2 = pnand %p47_p1, %p44_p0 }
   0x7   :  { %52 = shalt.err (!%p49_p2)
}
   0x8   :  { %s53_s15 = scalar_lea.vmem %s15_s7, 128  ;;  %p58_p4 = scmp.lt.s32.totalorder %s15_s7, %s15_s7 }
   0x9   :  { %p54_p3 = scmp.ne.s32.totalorder %s15_s7, %s53_s15  ;;  %p59_p5 = scmp.lt.s32.totalorder %s53_s15, %s53_s15 }
   0xb   :  { %p60_p6 = por %p59_p5, %p58_p4 }
   0xd   :  { %p61_p7 = pnand %p60_p6, %p54_p3 }
   0xf   :  { %64 = shalt.err (!%p61_p7)
}
  0x10   :  { %17 = dma.hbm_to_vmem [thread:$0]  %s128_s0, 128, %s15_s7, [#allocation3]  }
  0x11   :  { %87 = dma.done.wait [#allocation3], 128  }
  0x12   :  { %88 = vsyncadd [#allocation3], 4294967168  ;;  %v21_v0 = vld [vmem:[#allocation2] sm:$0xff]  ;;  %s92_s18 = smov 1   ;;  %s93_s19 = smov [#allocation5]  }
  0x13   :  { %22 = vrot.lane.b32.xlu0 %v21_v0, %s92_s18  ;;  %s31_s20 = sshll.u32 %s93_s19, 4  ;;  %s32_s20 = int_to_ptr.vmem [resolvable:$true] %s31_s20 }
  0x14   :  { %s65_s21 = scalar_lea.vmem %s32_s20, 128  ;;  %p70_p9 = scmp.lt.s32.totalorder %s32_s20, %s32_s20 }
  0x15   :  { %p66_p8 = scmp.ne.s32.totalorder %s32_s20, %s65_s21  ;;  %p71_p10 = scmp.lt.s32.totalorder %s65_s21, %s65_s21 }
  0x17   :  { %p72_p11 = por %p71_p10, %p70_p9 }
  0x19   :  { %p73_p12 = pnand %p72_p11, %p66_p8 }
  0x85   :  { %v23_v1 = vpop.permute.xlu0 %22 }
  0x86   :  { %24 = vst [vmem:[#allocation5] sm:$0xff] %v23_v1 }
  0x87   :  { %76 = shalt.err (!%p73_p12)
}
  0x88   :  { %s77_s0 = scalar_lea.hbm %s129_s1, 128 }
  0x89   :  { %p78_p13 = scmp.ne.s32.totalorder %s129_s1, %s77_s0  ;;  %p81_p0 = scmp.lt.u32.totalorder %s77_s0, %s129_s1 }
  0x8b   :  { %p83_p1 = pnand %p81_p0, %p78_p13 }
  0x8d   :  { %86 = shalt.err (!%p83_p1)
}
  0x8e   :  { %34 = dma.vmem_to_hbm [thread:$0]  %s32_s20, 128, %s129_s1, [#allocation4]  }
  0x8f   :  { %89 = dma.done.wait [#allocation4], 128  }
  0x90   :  { %90 = vsyncadd [#allocation4], 4294967168 }
  0x91   :  { %38 = vsyncpa [#allocation3], 1 }
  0x92   :  { %39 = vsyncpa [#allocation4], 1 }

// kernel: encoder_conv_block.1
= control target key start
LH: loop header
LB: loop body
LE: loop exit
PB: predicated region body
PF: predicated region fallthrough
CT: control target
= control target key end

     0   :  { %s1541_s27 = smov 18   ;;  %s1543_s28 = smov 17   ;;  %v1548_v12 = vmov 0.0   ;;  %vm89_vm0 = vcmask 146432   ;;  %vm136_vm1 = vcmask 7168   ;;  %vm63_vm2 = vcmask 154624   ;;  %s2226_s0 = inlined_call_operand.vmem [shape: f32[4,768], index: 0, kind: input, shape index: {}]   ;;  %s2227_s1 = inlined_call_operand.vmem [shape: f32[8,36], index: 1, kind: input, shape index: {}]   ;;  %s2228_s5 = inlined_call_operand.vmem [shape: f32[1,384], index: 5, kind: input, shape index: {}]   ;;  %s2229_s3 = inlined_call_operand.vmem [shape: f32[8,1], index: 3, kind: input, shape index: {}]   ;;  %s2230_s4 = inlined_call_operand.vmem [shape: f32[8,1], index: 4, kind: input, shape index: {}]   ;;  %s2231_s2 = inlined_call_operand.vmem [shape: f32[8,72], index: 2, kind: input, shape index: {}]   ;;  %s2232_s6 = inlined_call_operand.vmem [shape: f32[8,768], index: 6, kind: output, shape index: {}]  }
   0x1   :  { %v1589_v0 = vld [vmem:[%s2226_s0 + $0x8] sm:$0xff]  ;;  %v1594_v1 = vld [vmem:[%s2226_s0 + $0x10] sm:$0xff]  ;;  %v1599_v2 = vld [vmem:[%s2226_s0] sm:$0xff]  ;;  %s1542_s0 = smov 1   ;;  %s1544_s29 = smov 19   ;;  %394 = vmatprep.mubr.f32.mxu0 %v1548_v12  ;;  %465 = vmatprep.mubr.f32.mxu1 %v1548_v12  ;;  %vm110_vm3 = vcmask 138240  }
   0x2   :  { %v1603_v3 = vcombine.high %v1594_v1, %v1594_v1  ;;  %v1607_v4 = vcombine.high %v1599_v2, %v1599_v2  ;;  %v1625_v8 = vcombine.high %v1589_v0, %v1589_v0  ;;  %s1545_s30 = smov 110   ;;  %s1546_s7 = smov 127   ;;  %vm288_vm4 = vcmask 1043456  }
   0x3   :  { %s1547_s8 = smov 111   ;;  %s1549_s9 = smov 109   ;;  %vm156_vm5 = vcmask 1039360   ;;  %vm203_vm6 = vcmask 900096   ;;  %vm177_vm7 = vcmask 908288   ;;  %vm224_vm8 = vcmask 891904  }
   0x4   :  { %v1352_v5 = vpack.i.bf16 %v1589_v0, %v1603_v3  ;;  %v1342_v6 = vpack.i.bf16 %v1607_v4, %v1599_v2  ;;  %v1387_v7 = vpack.i.bf16 %v1589_v0, %v1607_v4  ;;  %v1397_v9 = vpack.i.bf16 %v1625_v8, %v1599_v2 }
   0x5   :  { %v1407_v10 = vpack.i.bf16 %v1594_v1, %v1625_v8  ;;  %v1437_v11 = vpack.i.bf16 %v1603_v3, %v1594_v1  ;;  %vm313_vm9 = vcmask 293888  }
   0x6   :  { %1353 = vrot.lane.b32.xlu1 %v1352_v5, %s1541_s27  ;;  %1343 = vrot.lane.b32.xlu0 %v1342_v6, %s1541_s27 }
   0xa   :  { %1358 = vrot.lane.b32.xlu1 %v1352_v5, %s1542_s0  ;;  %1348 = vrot.lane.b32.xlu0 %v1342_v6, %s1542_s0 }
   0xe   :  { %1368 = vrot.lane.b32.xlu1 %v1342_v6, %s1543_s28  ;;  %1363 = vrot.lane.b32.xlu0 %v1342_v6, %s1544_s29 }
  0x12   :  { %1378 = vrot.lane.b32.xlu1 %v1352_v5, %s1543_s28  ;;  %1373 = vrot.lane.b32.xlu0 %v1352_v5, %s1544_s29 }
  0x16   :  { %1388 = vrot.lane.b32.xlu1 %v1387_v7, %s1545_s30  ;;  %1383 = vrot.lane.b32.xlu0 %v1387_v7, %s1546_s7 }
  0x1a   :  { %1398 = vrot.lane.b32.xlu1 %v1397_v9, %s1545_s30  ;;  %1393 = vrot.lane.b32.xlu0 %v1397_v9, %s1546_s7 }
  0x1e   :  { %1408 = vrot.lane.b32.xlu1 %v1407_v10, %s1542_s0  ;;  %1403 = vrot.lane.b32.xlu0 %v1407_v10, %s1541_s27 }
  0x22   :  { %1418 = vrot.lane.b32.xlu1 %v1397_v9, %s1547_s8  ;;  %1413 = vrot.lane.b32.xlu0 %v1387_v7, %s1547_s8 }
  0x26   :  { %1428 = vrot.lane.b32.xlu1 %v1407_v10, %s1543_s28  ;;  %1423 = vrot.lane.b32.xlu0 %v1407_v10, %s1544_s29 }
  0x2a   :  { %1438 = vrot.lane.b32.xlu1 %v1437_v11, %s1545_s30  ;;  %1433 = vrot.lane.b32.xlu0 %v1437_v11, %s1546_s7 }
  0x2e   :  { %214 = vrot.lane.b32.xlu1 %v1607_v4, %s1549_s9  ;;  %173 = vrot.lane.b32.xlu0 %v1594_v1, %s1547_s8 }
  0x32   :  { %212 = vrot.lane.b32.xlu1 %v1599_v2, %s1549_s9  ;;  %216 = vrot.lane.b32.xlu0 %v1589_v0, %s1549_s9 }
  0x36   :  { %218 = vrot.lane.b32.xlu1 %v1625_v8, %s1549_s9  ;;  %175 = vrot.lane.b32.xlu0 %v1603_v3, %s1547_s8 }
  0x3a   :  { %222 = vrot.lane.b32.xlu1 %v1603_v3, %s1549_s9  ;;  %220 = vrot.lane.b32.xlu0 %v1594_v1, %s1549_s9 }
  0x78   :  { %v1663_v13 = vpop.permute.xlu1 %1353  ;;  %v1344_v14 = vpop.permute.xlu0 %1343 }
  0x79   :  { %v1346_v15 = vunpack.i.h.bf16 %v1344_v14  ;;  %v1345_v16 = vunpack.i.l.bf16 %v1344_v14  ;;  %v1355_v21 = vunpack.i.l.bf16 %v1663_v13  ;;  %v1356_v46 = vunpack.i.h.bf16 %v1663_v13 }
  0x7b   :  { %v90_v23 = vsel %vm89_vm0, %v1345_v16, %v1346_v15  ;;  %v96_v33 = vsel %vm89_vm0, %v1355_v21, %v1345_v16  ;;  %v91_v57 = vsel %vm89_vm0, %v1346_v15, %v1356_v46 }
  0x7c   :  { %v1665_v17 = vpop.permute.xlu1 %1358  ;;  %v1349_v18 = vpop.permute.xlu0 %1348  ;;  %v235_v31 = vrot.slane %v90_v23, 4  ;;  %v234_v43 = vrot.slane %v96_v33, 4  ;;  %v236_v9 = vrot.slane %v91_v57, 4 }
  0x7d   :  { %v1351_v19 = vunpack.i.h.bf16 %v1349_v18  ;;  %v1350_v20 = vunpack.i.l.bf16 %v1349_v18  ;;  %v1360_v22 = vunpack.i.l.bf16 %v1665_v17  ;;  %v1361_v47 = vunpack.i.h.bf16 %v1665_v17 }
  0x7f   :  { %v137_v24 = vsel %vm136_vm1, %v1350_v20, %v1351_v19  ;;  %v143_v34 = vsel %vm136_vm1, %v1360_v22, %v1350_v20  ;;  %v138_v58 = vsel %vm136_vm1, %v1351_v19, %v1361_v47 }
  0x80   :  { %v1369_v25 = vpop.permute.xlu1 %1368  ;;  %v1364_v26 = vpop.permute.xlu0 %1363  ;;  %v248_v32 = vrot.slane %v137_v24, 4  ;;  %v247_v44 = vrot.slane %v143_v34, 4  ;;  %v249_v10 = vrot.slane %v138_v58, 4 }
  0x81   :  { %v1371_v27 = vunpack.i.h.bf16 %v1369_v25  ;;  %v1370_v28 = vunpack.i.l.bf16 %v1369_v25  ;;  %v1366_v29 = vunpack.i.h.bf16 %v1364_v26  ;;  %v1365_v30 = vunpack.i.l.bf16 %v1364_v26 }
  0x83   :  { %v64_v35 = vsel %vm63_vm2, %v1365_v30, %v1366_v29  ;;  %v111_v36 = vsel %vm110_vm3, %v1370_v28, %v1371_v27 }
  0x84   :  { %v1679_v37 = vpop.permute.xlu1 %1378  ;;  %v1681_v38 = vpop.permute.xlu0 %1373  ;;  %v290_v39 = vsel %vm288_vm4, %v64_v35, %v235_v31  ;;  %v296_v40 = vsel %vm288_vm4, %v111_v36, %v248_v32 }
  0x85   :  { %v1380_v41 = vunpack.i.l.bf16 %v1679_v37  ;;  %v1375_v42 = vunpack.i.l.bf16 %v1681_v38  ;;  %v1260_v45 = vpack.c.bf16 %v296_v40, %v290_v39  ;;  %v1381_v54 = vunpack.i.h.bf16 %v1679_v37 }
  0x86   :  { %v1376_v55 = vunpack.i.h.bf16 %v1681_v38 }
  0x87   :  { %v75_v48 = vsel %vm63_vm2, %v1375_v42, %v1365_v30  ;;  %v122_v49 = vsel %vm110_vm3, %v1380_v41, %v1370_v28  ;;  %1261 = vmatprep.subr.bf16.mxu0 %v1260_v45  ;;  %v112_v7 = vsel %vm110_vm3, %v1371_v27, %v1381_v54 }
  0x88   :  { %v1389_v50 = vpop.permute.xlu1 %1388  ;;  %v1384_v51 = vpop.permute.xlu0 %1383  ;;  %v289_v52 = vsel %vm288_vm4, %v75_v48, %v234_v43  ;;  %v295_v53 = vsel %vm288_vm4, %v122_v49, %v247_v44  ;;  %v65_v6 = vsel %vm63_vm2, %v1366_v29, %v1376_v55  ;;  %v1724_v24 = vsel %vm288_vm4, %v112_v7, %v249_v10 }
  0x89   :  { %v1262_v56 = vpack.c.bf16 %v295_v53, %v289_v52  ;;  %v1386_v59 = vunpack.i.h.bf16 %v1384_v51  ;;  %v1385_v60 = vunpack.i.l.bf16 %v1384_v51  ;;  %v1391_v11 = vunpack.i.h.bf16 %v1389_v50 }
  0x8a   :  { %v1390_v14 = vunpack.i.l.bf16 %v1389_v50  ;;  %v1721_v23 = vsel %vm288_vm4, %v65_v6, %v236_v9 }
  0x8b   :  { %1263 = vmatpush1.bf16.msra.mxu0 %v1262_v56  ;;  %v158_v15 = vsel %vm156_vm5, %v1385_v60, %v1386_v59  ;;  %v1270_v30 = vpack.c.bf16 %v1724_v24, %v1721_v23  ;;  %v43_v23 = vld [vmem:[%s2227_s1] sm:$0xff] }
  0x8c   :  { %v1705_v61 = vpop.permute.xlu1 %1398  ;;  %v1707_v62 = vpop.permute.xlu0 %1393  ;;  %v264_v27 = vrot.slane %v158_v15, 4  ;;  %v205_v28 = vsel %vm203_vm6, %v1390_v14, %v1391_v11 }
  0x8d   :  { %v1396_v63 = vunpack.i.h.bf16 %v1707_v62  ;;  %v1395_v5 = vunpack.i.l.bf16 %v1707_v62  ;;  %v1400_v16 = vunpack.i.l.bf16 %v1705_v61  ;;  %v1401_v18 = vunpack.i.h.bf16 %v1705_v61 }
  0x8e   :  { %v277_v45 = vrot.slane %v205_v28, 4  ;;  %v302_v50 = vsel %vm288_vm4, %v1607_v4, %v264_v27 }
  0x8f   :  { %v157_v25 = vsel %vm156_vm5, %v1395_v5, %v1385_v60  ;;  %v159_v26 = vsel %vm156_vm5, %v1386_v59, %v1396_v63  ;;  %v204_v29 = vsel %vm203_vm6, %v1400_v16, %v1390_v14  ;;  %v1741_v31 = vsel %vm203_vm6, %v1391_v11, %v1401_v18 }
  0x90   :  { %v1409_v19 = vpop.permute.xlu1 %1408  ;;  %v1404_v20 = vpop.permute.xlu0 %1403  ;;  %v263_v32 = vrot.slane %v157_v25, 4  ;;  %v265_v33 = vrot.slane %v159_v26, 4  ;;  %v276_v48 = vrot.slane %v204_v29, 4  ;;  %v278_v51 = vrot.slane %v1741_v31, 4 }
  0x91   :  { %v1405_v34 = vunpack.i.l.bf16 %v1404_v20  ;;  %v1410_v39 = vunpack.i.l.bf16 %v1409_v19  ;;  %v1411_v49 = vunpack.i.h.bf16 %v1409_v19  ;;  %v1406_v52 = vunpack.i.h.bf16 %v1404_v20 }
  0x92   :  { %v301_v60 = vsel %vm288_vm4, %v1599_v2, %v263_v32  ;;  %v1765_v11 = vsel %vm288_vm4, %v1589_v0, %v265_v33 }
  0x93   :  { %v92_v4 = vsel %vm89_vm0, %v1356_v46, %v1405_v34  ;;  %v139_v10 = vsel %vm136_vm1, %v1361_v47, %v1410_v39  ;;  %v141_v2 = vsel %vm136_vm1, %v1411_v49, %v1360_v22  ;;  %v140_v46 = vsel %vm136_vm1, %v1410_v39, %v1411_v49 }
  0x94   :  { %v1743_v35 = vpop.permute.xlu1 %1418  ;;  %v1414_v36 = vpop.permute.xlu0 %1413  ;;  %v94_v20 = vsel %vm89_vm0, %v1406_v52, %v1355_v21  ;;  %v237_v25 = vrot.slane %v92_v4, 4  ;;  %v250_v28 = vrot.slane %v139_v10, 4  ;;  %v252_v29 = vrot.slane %v141_v2, 4 }
  0x95   :  { %v1420_v40 = vunpack.i.l.bf16 %v1743_v35  ;;  %v1416_v43 = vunpack.i.h.bf16 %v1414_v36  ;;  %v1415_v44 = vunpack.i.l.bf16 %v1414_v36  ;;  %v1421_v14 = vunpack.i.h.bf16 %v1743_v35 }
  0x96   :  { %v93_v13 = vsel %vm89_vm0, %v1405_v34, %v1406_v52  ;;  %v251_v32 = vrot.slane %v140_v46, 4 }
  0x97   :  { %v178_v53 = vsel %vm177_vm7, %v1420_v40, %v1415_v44  ;;  %v179_v56 = vsel %vm177_vm7, %v1415_v44, %v1416_v43  ;;  %v180_v33 = vsel %vm177_vm7, %v1416_v43, %v1421_v14 }
  0x98   :  { %v1429_v57 = vpop.permute.xlu1 %1428  ;;  %v1424_v58 = vpop.permute.xlu0 %1423  ;;  %v308_v59 = vsel %vm288_vm4, %v179_v56, %v277_v45  ;;  %v307_v6 = vsel %vm288_vm4, %v178_v53, %v276_v48  ;;  %v239_v45 = vrot.slane %v94_v20, 4  ;;  %v238_v48 = vrot.slane %v93_v13, 4 }
  0x99   :  { %v1430_v7 = vunpack.i.l.bf16 %v1429_v57  ;;  %v1425_v9 = vunpack.i.l.bf16 %v1424_v58  ;;  %v1264_v15 = vpack.c.bf16 %v308_v59, %v302_v50  ;;  %v1266_v19 = vpack.c.bf16 %v307_v6, %v301_v60 }
  0x9a   :  { %v1426_v47 = vunpack.i.h.bf16 %v1424_v58  ;;  %v1431_v26 = vunpack.i.h.bf16 %v1429_v57 }
  0x9b   :  { %1265 = vmatprep.subr.bf16.mxu0 %v1264_v15  ;;  %v66_v17 = vsel %vm63_vm2, %v1376_v55, %v1425_v9  ;;  %v113_v22 = vsel %vm110_vm3, %v1381_v54, %v1430_v7 }
  0x9c   :  { %v1439_v0 = vpop.permute.xlu1 %1438  ;;  %v1434_v27 = vpop.permute.xlu0 %1433  ;;  %1267 = vmatpush1.bf16.msra.mxu0 %v1266_v19  ;;  %v292_v36 = vsel %vm288_vm4, %v66_v17, %v237_v25  ;;  %v298_v39 = vsel %vm288_vm4, %v113_v22, %v250_v28  ;;  %v68_v55 = vsel %vm63_vm2, %v1426_v47, %v1375_v42  ;;  %v115_v43 = vsel %vm110_vm3, %v1431_v26, %v1380_v41 }
  0x9d   :  { %v1440_v31 = vunpack.i.l.bf16 %v1439_v0  ;;  %v1435_v21 = vunpack.i.l.bf16 %v1434_v27  ;;  %v1436_v34 = vunpack.i.h.bf16 %v1434_v27  ;;  %v67_v42 = vsel %vm63_vm2, %v1425_v9, %v1426_v47 }
  0x9e   :  { %v1441_v52 = vunpack.i.h.bf16 %v1439_v0  ;;  %v1268_v56 = vpack.c.bf16 %v298_v39, %v292_v36  ;;  %v294_v58 = vsel %vm288_vm4, %v68_v55, %v239_v45  ;;  %v300_v9 = vsel %vm288_vm4, %v115_v43, %v252_v29 }
  0x9f   :  { %v207_v54 = vsel %vm203_vm6, %v1401_v18, %v1440_v31  ;;  %v160_v44 = vsel %vm156_vm5, %v1396_v63, %v1435_v21  ;;  %v114_v18 = vsel %vm110_vm3, %v1430_v7, %v1431_v26  ;;  %v309_v63 = vsel %vm288_vm4, %v180_v33, %v278_v51 }
  0xa0   :  { %v279_v49 = vrot.slane %v207_v54, 4  ;;  %v215_v50 = vpop.permute.xlu1 %214  ;;  %v174_v38 = vpop.permute.xlu0 %173  ;;  %v266_v53 = vrot.slane %v160_v44, 4  ;;  %v161_v37 = vsel %vm156_vm5, %v1435_v21, %v1436_v34  ;;  %v164_v41 = vsel %vm156_vm5, %v1436_v34, %v1395_v5  ;;  %1269 = vmatprep.subr.bf16.mxu1 %v1268_v56 }
  0xa1   :  { %v181_v57 = vsel %vm177_vm7, %v1421_v14, %v174_v38  ;;  %v208_v6 = vsel %vm203_vm6, %v1440_v31, %v1441_v52  ;;  %1271 = vmatpush1.bf16.msra.mxu1 %v1270_v30  ;;  %v293_v62 = vsel %vm288_vm4, %v67_v42, %v238_v48  ;;  %v211_v5 = vsel %vm203_vm6, %v1441_v52, %v1400_v16 }
  0xa2   :  { %v310_v59 = vsel %vm288_vm4, %v181_v57, %v279_v49  ;;  %v304_v60 = vsel %vm288_vm4, %v1625_v8, %v266_v53  ;;  %v299_v24 = vsel %vm288_vm4, %v114_v18, %v251_v32  ;;  %v267_v30 = vrot.slane %v161_v37, 4  ;;  %v23_v32 = vld [vmem:[%s2228_s5] sm:$0x7] }
  0xa3   :  { %v1272_v7 = vpack.c.bf16 %v310_v59, %v304_v60  ;;  %v268_v2 = vrot.slane %v164_v41, 4  ;;  %v1274_v14 = vpack.c.bf16 %v309_v63, %v1765_v11  ;;  %v1276_v61 = vpack.c.bf16 %v300_v9, %v294_v58 }
  0xa4   :  { %v213_v51 = vpop.permute.xlu1 %212  ;;  %v217_v4 = vpop.permute.xlu0 %216  ;;  %v280_v16 = vrot.slane %v208_v6, 4  ;;  %v281_v15 = vrot.slane %v211_v5, 4  ;;  %v1278_v20 = vpack.c.bf16 %v299_v24, %v293_v62  ;;  %v305_v11 = vsel %vm288_vm4, %v1594_v1, %v267_v30 }
  0xa5   :  { %v225_v10 = vsel %vm224_vm8, %v213_v51, %v215_v50  ;;  %v226_v8 = vsel %vm224_vm8, %v215_v50, %v217_v4  ;;  %1273 = vmatprep.subr.bf16.mxu1 %v1272_v7  ;;  %v306_v27 = vsel %vm288_vm4, %v1603_v3, %v268_v2  ;;  %v25_v3 = vlaneseq }
  0xa6   :  { %1248 = vmatprep.subr.msk.mxu0 %vm288_vm4, %v226_v8  ;;  %1275 = vmatpush1.bf16.msra.mxu1 %v1274_v14  ;;  %v1550_v30 = vmov 0  }
  0xa7   :  { %1249 = vmatpush1.msk.msra.mxu0 %vm288_vm4, %v225_v10  ;;  %v26_v31 = vshrl.u32 %v25_v3, 7  ;;  %1442 = vset.pattern.permute.xlu0 %v1550_v30 }
  0xa8   :  { %v219_v19 = vpop.permute.xlu1 %218  ;;  %v176_v46 = vpop.permute.xlu0 %175  ;;  %1250 = vmatmul.mubr.msk.f32.vlgmr.msra.gmra.mrb[0].mxu0 %vm313_vm9, %v43_v23  ;;  %1277 = vmatprep.subr.bf16.mxu0 %v1276_v61 }
  0xa9   :  { %v182_v47 = vsel %vm177_vm7, %v174_v38, %v176_v46  ;;  %v190_v25 = vsel %vm177_vm7, %v176_v46, %v1420_v40  ;;  %536 = vmatprep.mubr.f32.mxu0 %v1548_v12  ;;  %1279 = vmatpush1.bf16.msra.mxu0 %v1278_v20  ;;  %v227_v13 = vsel %vm224_vm8, %v217_v4, %v219_v19  ;;  %v27_v21 = vsub.s32 0, %v26_v31 }
  0xaa   :  { %v311_v26 = vsel %vm288_vm4, %v182_v47, %v280_v16  ;;  %v312_v0 = vsel %vm288_vm4, %v190_v25, %v281_v15  ;;  %v31_v33 = vsub.s32 1, %v26_v31  ;;  %v35_v54 = vsub.s32 2, %v26_v31  ;;  %1443 = vset.pattern.permute.xlu1 %v1550_v30  ;;  %v1877_v47 = vld [vmem:[%s2229_s3] sm:$0xff] }
  0xab   :  { %v1282_v17 = vpack.c.bf16 %v311_v26, %v305_v11  ;;  %v1280_v22 = vpack.c.bf16 %v312_v0, %v306_v27  ;;  %v28_v36 = vrot.slane %v23_v32, %v27_v21  ;;  %v1883_v26 = vld [vmem:[%s2230_s4] sm:$0xff] }
  0xac   :  { %v223_v28 = vpop.permute.xlu1 %222  ;;  %v221_v35 = vpop.permute.xlu0 %220  ;;  %v32_v39 = vrot.slane %v23_v32, %v31_v33  ;;  %v36_v43 = vrot.slane %v23_v32, %v35_v54 }
  0xad   :  { %v232_v40 = vsel %vm224_vm8, %v223_v28, %v213_v51  ;;  %v228_v29 = vsel %vm224_vm8, %v219_v19, %v221_v35  ;;  %1281 = vmatprep.subr.bf16.mxu0 %v1280_v22  ;;  %v229_v1 = vsel %vm224_vm8, %v221_v35, %v223_v28  ;;  %v1854_v55 = vrot.slane %v28_v36, %v27_v21 }
  0xae   :  { %1251 = vmatprep.subr.msk.mxu1 %vm288_vm4, %v228_v29  ;;  %1283 = vmatpush1.bf16.msra.mxu0 %v1282_v17  ;;  %v1856_v34 = vrot.slane %v32_v39, %v27_v21  ;;  %v1860_v52 = vrot.slane %v36_v43, %v27_v21 }
  0xaf   :  { %1252 = vmatpush1.msk.msra.mxu1 %vm288_vm4, %v227_v13  ;;  %1254 = vmatprep.subr.msk.mxu0 %vm288_vm4, %v232_v40 }
  0xb0   :  { %1253 = vmatmul.mubr.msk.f32.vlgmr.msra.gmra.mrb[0].mxu1 %vm313_vm9, %v43_v23 }
  0xb1   :  { %914 = vmatprep.mubr.f32.mxu1 %v1548_v12 }
  0xb2   :  { %1255 = vmatpush1.msk.msra.mxu0 %vm288_vm4, %v229_v1  ;;  %vm846_vm4 = vcmask 588800  }
  0xb3   :  { %1256 = vmatmul.mubr.msk.f32.vlgmr.msra.gmra.mrb[2].mxu0 %vm313_vm9, %v43_v23 }
  0xb4   :  { %985 = vmatprep.mubr.f32.mxu0 %v1548_v12 }
 0x17b   :  { %v396_v44 = vpop.f32.mrb[0].mxu0 }
 0x17c   :  { %v555_v45 = vmul.f32 %v1854_v55, %v396_v44  ;;  %v398_v48 = vpop.f32.mrb[1].mxu0 }
 0x17d   :  { %v556_v49 = vmul.f32 %v1856_v34, %v398_v48 }
 0x17e   :  { %v569_v50 = vmul.f32 %v555_v45, %v396_v44 }
 0x17f   :  { %v561_v38 = vadd.f32 %v556_v49, %v555_v45  ;;  %v570_v42 = vmul.f32 %v556_v49, %v398_v48 }
 0x181   :  { %v575_v53 = vadd.f32 %v570_v42, %v569_v50 }
 0x183   :  { %v467_v56 = vpop.f32.mrb[0].mxu1 }
 0x184   :  { %v557_v18 = vmul.f32 %v1860_v52, %v467_v56  ;;  %v1863_v57 = vpop.f32.mrb[1].mxu1 }
 0x185   :  { %v558_v63 = vmul.f32 %v1854_v55, %v1863_v57 }
 0x186   :  { %v562_v58 = vadd.f32 %v561_v38, %v557_v18  ;;  %v571_v37 = vmul.f32 %v557_v18, %v467_v56  ;;  %v1867_v41 = vpop.f32.mrb[2].mxu0 }
 0x187   :  { %v572_v59 = vmul.f32 %v558_v63, %v1863_v57  ;;  %v559_v60 = vmul.f32 %v1856_v34, %v1867_v41  ;;  %v540_v6 = vpop.f32.mrb[3].mxu0 }
 0x188   :  { %v576_v51 = vadd.f32 %v575_v53, %v571_v37  ;;  %v560_v4 = vmul.f32 %v1860_v52, %v540_v6  ;;  %v563_v7 = vadd.f32 %v562_v58, %v558_v63 }
 0x189   :  { %v573_v9 = vmul.f32 %v559_v60, %v1867_v41 }
 0x18a   :  { %v564_v62 = vadd.f32 %v563_v7, %v559_v60  ;;  %v577_v5 = vadd.f32 %v576_v51, %v572_v59  ;;  %v574_v8 = vmul.f32 %v560_v4, %v540_v6 }
 0x18c   :  { %v565_v10 = vadd.f32 %v564_v62, %v560_v4  ;;  %v578_v23 = vadd.f32 %v577_v5, %v573_v9 }
 0x18e   :  { %566 = vadd.xlane.f32.xlu0 %v565_v10  ;;  %v579_v24 = vadd.f32 %v578_v23, %v574_v8 }
 0x190   :  { %580 = vadd.xlane.f32.xlu1 %v579_v24 }
 0x21b   :  { %v567_v2 = vpop.xlane.xlu0 %566 }
 0x21c   :  { %v568_v14 = vmul.f32 0.001953125, %v567_v2 }
 0x21d   :  { %v581_v61 = vpop.xlane.xlu1 %580 }
 0x21e   :  { %v583_v16 = vmul.f32 %v568_v14, %v568_v14  ;;  %v582_v15 = vmul.f32 0.001953125, %v581_v61 }
 0x220   :  { %v584_v19 = vsub.f32 %v582_v15, %v583_v16 }
 0x222   :  { %v585_v46 = vmax.f32 %v584_v19, 0.0 }
 0x224   :  { %v587_v20 = vadd.f32 1e-05, %v585_v46 }
 0x226   :  { %1537 = vrsqrt.f32 %v587_v20 }
 0x230   :  { %v1538_v25 = vpop.eup %1537 }
 0x231   :  { %v589_v11 = vmul.f32 %v1538_v25, %v1877_v47 }
 0x233   :  { %595 = vperm.xlu0 %1442, %v589_v11   ;;  %v591_v0 = vmul.f32 %v589_v11, %v568_v14 }
 0x235   :  { %v592_v27 = vsub.f32 %v1883_v26, %v591_v0 }
 0x237   :  { %606 = vperm.xlu1 %1443, %v592_v27  }
 0x2b2   :  { %v596_v17 = vpop.permute.xlu0 %595 }
 0x2b3   :  { %v598_v22 = vmul.f32 %v596_v17, %v396_v44  ;;  %v599_v28 = vmul.f32 %v596_v17, %v398_v48  ;;  %v600_v35 = vmul.f32 %v596_v17, %v467_v56  ;;  %v603_v40 = vmul.f32 %v596_v17, %v540_v6 }
 0x2b4   :  { %v601_v38 = vmul.f32 %v596_v17, %v1863_v57  ;;  %v602_v42 = vmul.f32 %v596_v17, %v1867_v41 }
 0x2b6   :  { %v607_v29 = vpop.permute.xlu1 %606 }
 0x2b7   :  { %v609_v13 = vadd.f32 %v607_v29, %v598_v22  ;;  %v610_v1 = vadd.f32 %v607_v29, %v599_v28  ;;  %v611_v3 = vadd.f32 %v607_v29, %v600_v35  ;;  %v614_v31 = vadd.f32 %v607_v29, %v603_v40 }
 0x2b8   :  { %v612_v18 = vadd.f32 %v607_v29, %v601_v38  ;;  %v613_v63 = vadd.f32 %v607_v29, %v602_v42 }
 0x2b9   :  { %vm615_vm10 = vcmp.ge.f32.partialorder %v609_v13, 0.0  ;;  %vm616_vm11 = vcmp.ge.f32.partialorder %v610_v1, 0.0  ;;  %vm617_vm12 = vcmp.ge.f32.partialorder %v611_v3, 0.0  ;;  %vm620_vm13 = vcmp.ge.f32.partialorder %v614_v31, 0.0 }
 0x2ba   :  { %v621_v21 = vmul.f32 0.0, %v609_v13  ;;  %v622_v32 = vmul.f32 0.0, %v610_v1  ;;  %v623_v33 = vmul.f32 0.0, %v611_v3  ;;  %v626_v36 = vmul.f32 0.0, %v614_v31 }
 0x2bb   :  { %v624_v37 = vmul.f32 0.0, %v612_v18  ;;  %v625_v59 = vmul.f32 0.0, %v613_v63  ;;  %vm618_vm14 = vcmp.ge.f32.partialorder %v612_v18, 0.0  ;;  %vm619_vm15 = vcmp.ge.f32.partialorder %v613_v63, 0.0 }
 0x2bc   :  { %v627_v39 = vsel %vm615_vm10, %v609_v13, %v621_v21  ;;  %v628_v54 = vsel %vm616_vm11, %v610_v1, %v622_v32  ;;  %v629_v45 = vsel %vm617_vm12, %v611_v3, %v623_v33  ;;  %v632_v44 = vsel %vm620_vm13, %v614_v31, %v626_v36 }
 0x2bd   :  { %v1887_v48 = vmul.f32 %v627_v39, %v1854_v55  ;;  %v1890_v43 = vmul.f32 %v628_v54, %v1856_v34  ;;  %v1893_v49 = vmul.f32 %v629_v45, %v1860_v52  ;;  %v1896_v50 = vmul.f32 %v632_v44, %v1860_v52 }
 0x2be   :  { %v630_v57 = vsel %vm618_vm14, %v612_v18, %v624_v37  ;;  %v631_v41 = vsel %vm619_vm15, %v613_v63, %v625_v59 }
 0x2bf   :  { %v1444_v53 = vpack.i.bf16 %v1890_v43, %v1887_v48  ;;  %v1474_v56 = vpack.i.bf16 %v1893_v49, %v1896_v50  ;;  %v1484_v58 = vpack.i.bf16 %v1893_v49, %v1890_v43  ;;  %v1913_v60 = vmul.f32 %v630_v57, %v1854_v55 }
 0x2c0   :  { %v1916_v6 = vmul.f32 %v631_v41, %v1856_v34 }
 0x2c1   :  { %1445 = vrot.lane.b32.xlu1 %v1444_v53, %s1544_s29  ;;  %1475 = vrot.lane.b32.xlu0 %v1474_v56, %s1543_s28 }
 0x2c2   :  { %v1499_v51 = vpack.i.bf16 %v1916_v6, %v1913_v60 }
 0x2c5   :  { %1450 = vrot.lane.b32.xlu1 %v1444_v53, %s1541_s27  ;;  %1485 = vrot.lane.b32.xlu0 %v1484_v58, %s1546_s7 }
 0x2c9   :  { %1455 = vrot.lane.b32.xlu1 %v1474_v56, %s1544_s29  ;;  %1490 = vrot.lane.b32.xlu0 %v1484_v58, %s1547_s8 }
 0x2cd   :  { %1460 = vrot.lane.b32.xlu1 %v1474_v56, %s1541_s27  ;;  %771 = vrot.lane.b32.xlu0 %v1887_v48, %s1547_s8 }
 0x2d1   :  { %1465 = vrot.lane.b32.xlu1 %v1444_v53, %s1543_s28  ;;  %1500 = vrot.lane.b32.xlu0 %v1499_v51, %s1544_s29 }
 0x2d5   :  { %1470 = vrot.lane.b32.xlu1 %v1444_v53, %s1542_s0  ;;  %1510 = vrot.lane.b32.xlu0 %v1499_v51, %s1543_s28 }
 0x2d9   :  { %1480 = vrot.lane.b32.xlu1 %v1474_v56, %s1542_s0  ;;  %823 = vrot.lane.b32.xlu0 %v1890_v43, %s1549_s9 }
 0x2dd   :  { %746 = vrot.lane.b32.xlu1 %v1887_v48, %s1546_s7  ;;  %821 = vrot.lane.b32.xlu0 %v1887_v48, %s1549_s9 }
 0x2e1   :  { %1495 = vrot.lane.b32.xlu1 %v1484_v58, %s1545_s30  ;;  %756 = vrot.lane.b32.xlu0 %v1896_v50, %s1546_s7 }
 0x2e5   :  { %796 = vrot.lane.b32.xlu1 %v1887_v48, %s1545_s30  ;;  %1530 = vrot.lane.b32.xlu0 %v1499_v51, %s1545_s30 }
 0x2e9   :  { %1505 = vrot.lane.b32.xlu1 %v1499_v51, %s1541_s27  ;;  %806 = vrot.lane.b32.xlu0 %v1896_v50, %s1545_s30 }
 0x2ed   :  { %1515 = vrot.lane.b32.xlu1 %v1499_v51, %s1542_s0  ;;  %829 = vrot.lane.b32.xlu0 %v1916_v6, %s1549_s9 }
 0x2f1   :  { %825 = vrot.lane.b32.xlu1 %v1893_v49, %s1549_s9 }
 0x2f5   :  { %1520 = vrot.lane.b32.xlu1 %v1499_v51, %s1546_s7 }
 0x2f9   :  { %1525 = vrot.lane.b32.xlu1 %v1499_v51, %s1547_s8 }
 0x2fd   :  { %781 = vrot.lane.b32.xlu1 %v1896_v50, %s1547_s8 }
 0x301   :  { %827 = vrot.lane.b32.xlu1 %v1913_v60, %s1549_s9 }
 0x305   :  { %831 = vrot.lane.b32.xlu1 %v1896_v50, %s1549_s9 }
 0x333   :  { %v1956_v4 = vpop.permute.xlu1 %1445  ;;  %v1958_v7 = vpop.permute.xlu0 %1475 }
 0x334   :  { %v1448_v9 = vunpack.i.h.bf16 %v1956_v4  ;;  %v1447_v62 = vunpack.i.l.bf16 %v1956_v4  ;;  %v1477_v32 = vunpack.i.l.bf16 %v1958_v7 }
 0x336   :  { %v659_v24 = vsel %vm63_vm2, %v1447_v62, %v1448_v9 }
 0x337   :  { %v1962_v5 = vpop.permute.xlu1 %1450  ;;  %v1964_v10 = vpop.permute.xlu0 %1485 }
 0x338   :  { %v1453_v8 = vunpack.i.h.bf16 %v1962_v5  ;;  %v1452_v23 = vunpack.i.l.bf16 %v1962_v5  ;;  %v1488_v29 = vunpack.i.h.bf16 %v1964_v10  ;;  %v1487_v13 = vunpack.i.l.bf16 %v1964_v10 }
 0x33a   :  { %v684_v30 = vsel %vm89_vm0, %v1452_v23, %v1453_v8  ;;  %v759_v36 = vsel %vm156_vm5, %v1487_v13, %v1488_v29 }
 0x33b   :  { %v1974_v2 = vpop.permute.xlu1 %1455  ;;  %v1284_v14 = vpack.c.bf16 %v684_v30, %v659_v24  ;;  %v1976_v61 = vpop.permute.xlu0 %1490  ;;  %v1292_v53 = vpack.c.bf16 %v759_v36, %v1890_v43  ;;  %v1478_v36 = vunpack.i.h.bf16 %v1958_v7 }
 0x33c   :  { %v1457_v16 = vunpack.i.l.bf16 %v1974_v2  ;;  %v1493_v56 = vunpack.i.h.bf16 %v1976_v61  ;;  %v1492_v18 = vunpack.i.l.bf16 %v1976_v61 }
 0x33d   :  { %1285 = vmatprep.subr.bf16.mxu1 %v1284_v14 }
 0x33e   :  { %v670_v46 = vsel %vm63_vm2, %v1457_v16, %v1447_v62  ;;  %v784_v43 = vsel %vm177_vm7, %v1492_v18, %v1493_v56 }
 0x33f   :  { %v1979_v15 = vpop.permute.xlu1 %1460  ;;  %v1985_v20 = vpop.permute.xlu0 %771 }
 0x340   :  { %v1462_v19 = vunpack.i.l.bf16 %v1979_v15  ;;  %v1463_v24 = vunpack.i.h.bf16 %v1979_v15  ;;  %v2080_v15 = vld [vmem:[%s2231_s2] sm:$0xff] }
 0x342   :  { %v695_v25 = vsel %vm89_vm0, %v1462_v19, %v1452_v23 }
 0x343   :  { %v1286_v11 = vpack.c.bf16 %v695_v25, %v670_v46  ;;  %v1990_v0 = vpop.permute.xlu1 %1465  ;;  %v1996_v28 = vpop.permute.xlu0 %1500  ;;  %v1458_v25 = vunpack.i.h.bf16 %v1974_v2 }
 0x344   :  { %v1468_v27 = vunpack.i.h.bf16 %v1990_v0  ;;  %v1467_v17 = vunpack.i.l.bf16 %v1990_v0  ;;  %v1502_v14 = vunpack.i.l.bf16 %v1996_v28 }
 0x345   :  { %1287 = vmatpush1.bf16.msra.mxu1 %v1286_v11 }
 0x346   :  { %v709_v1 = vsel %vm110_vm3, %v1467_v17, %v1468_v27  ;;  %v720_v39 = vsel %vm110_vm3, %v1477_v32, %v1467_v17 }
 0x347   :  { %v1994_v22 = vpop.permute.xlu1 %1470  ;;  %v2016_v54 = vpop.permute.xlu0 %1510 }
 0x348   :  { %v1473_v35 = vunpack.i.h.bf16 %v1994_v22  ;;  %v1472_v40 = vunpack.i.l.bf16 %v1994_v22  ;;  %v685_v22 = vsel %vm89_vm0, %v1453_v8, %v1463_v24  ;;  %v1503_v8 = vunpack.i.h.bf16 %v1996_v28 }
 0x349   :  { %v710_v28 = vsel %vm110_vm3, %v1468_v27, %v1478_v36 }
 0x34a   :  { %v734_v3 = vsel %vm136_vm1, %v1472_v40, %v1473_v35  ;;  %v662_v27 = vsel %vm63_vm2, %v1502_v14, %v1503_v8 }
 0x34b   :  { %v2006_v31 = vpop.permute.xlu1 %1480  ;;  %v1288_v21 = vpack.c.bf16 %v734_v3, %v709_v1  ;;  %v824_v37 = vpop.permute.xlu0 %823  ;;  %v661_v3 = vsel %vm63_vm2, %v1458_v25, %v1502_v14 }
 0x34c   :  { %v1482_v33 = vunpack.i.l.bf16 %v2006_v31 }
 0x34d   :  { %1289 = vmatprep.subr.bf16.mxu1 %v1288_v21 }
 0x34e   :  { %v745_v45 = vsel %vm136_vm1, %v1482_v33, %v1472_v40  ;;  %v1483_v40 = vunpack.i.h.bf16 %v2006_v31 }
 0x34f   :  { %v1290_v44 = vpack.c.bf16 %v745_v45, %v720_v39  ;;  %v2021_v38 = vpop.permute.xlu1 %746  ;;  %v2047_v46 = vpop.permute.xlu0 %821  ;;  %v660_v39 = vsel %vm63_vm2, %v1448_v9, %v1458_v25 }
 0x350   :  { %v758_v42 = vsel %vm156_vm5, %v2021_v38, %v1487_v13  ;;  %v1512_v13 = vunpack.i.l.bf16 %v2016_v54  ;;  %v1302_v5 = vpack.c.bf16 %v685_v22, %v660_v39 }
 0x351   :  { %1291 = vmatpush1.bf16.msra.mxu1 %v1290_v44  ;;  %v1294_v63 = vpack.c.bf16 %v758_v42, %v1887_v48  ;;  %v783_v48 = vsel %vm177_vm7, %v1985_v20, %v1492_v18 }
 0x352   :  { %1293 = vmatprep.subr.bf16.mxu1 %v1292_v53 }
 0x353   :  { %v2029_v58 = vpop.permute.xlu1 %1495  ;;  %v757_v42 = vpop.permute.xlu0 %756 }
 0x354   :  { %v1498_v59 = vunpack.i.h.bf16 %v2029_v58  ;;  %v1497_v57 = vunpack.i.l.bf16 %v2029_v58 }
 0x355   :  { %1295 = vmatpush1.bf16.msra.mxu1 %v1294_v63  ;;  %v735_v63 = vsel %vm136_vm1, %v1473_v35, %v1483_v40 }
 0x356   :  { %v809_v41 = vsel %vm203_vm6, %v1497_v57, %v1498_v59 }
 0x357   :  { %v2039_v51 = vpop.permute.xlu1 %796  ;;  %v1296_v62 = vpack.c.bf16 %v809_v41, %v784_v43  ;;  %v711_v43 = vsel %vm110_vm3, %v1478_v36, %v1512_v13 }
 0x358   :  { %v808_v23 = vsel %vm203_vm6, %v2039_v51, %v1497_v57  ;;  %v1513_v57 = vunpack.i.h.bf16 %v2016_v54  ;;  %v1306_v54 = vpack.c.bf16 %v735_v63, %v710_v28 }
 0x359   :  { %v1298_v30 = vpack.c.bf16 %v808_v23, %v783_v48  ;;  %1297 = vmatprep.subr.bf16.mxu1 %v1296_v62  ;;  %v833_v23 = vsel %vm224_vm8, %v2047_v46, %v824_v37 }
 0x35a   :  { %v713_v2 = vsel %vm110_vm3, %v1513_v57, %v1477_v32  ;;  %v712_v7 = vsel %vm110_vm3, %v1512_v13, %v1513_v57 }
 0x35b   :  { %v1506_v11 = vpop.permute.xlu1 %1505  ;;  %1299 = vmatpush1.bf16.msra.mxu1 %v1298_v30  ;;  %v1531_v30 = vpop.permute.xlu0 %1530 }
 0x35c   :  { %v1507_v17 = vunpack.i.l.bf16 %v1506_v11  ;;  %v1508_v1 = vunpack.i.h.bf16 %v1506_v11  ;;  %v1533_v32 = vunpack.i.h.bf16 %v1531_v30 }
 0x35e   :  { %v686_v21 = vsel %vm89_vm0, %v1463_v24, %v1507_v17  ;;  %v688_v9 = vsel %vm89_vm0, %v1508_v1, %v1462_v19  ;;  %v687_v41 = vsel %vm89_vm0, %v1507_v17, %v1508_v1  ;;  %v663_v19 = vsel %vm63_vm2, %v1503_v8, %v1457_v16 }
 0x35f   :  { %v1516_v45 = vpop.permute.xlu1 %1515  ;;  %v1300_v44 = vpack.c.bf16 %v686_v21, %v661_v3  ;;  %v1316_v24 = vpack.c.bf16 %v688_v9, %v663_v19  ;;  %v1318_v25 = vpack.c.bf16 %v687_v41, %v662_v27  ;;  %v1532_v17 = vunpack.i.l.bf16 %v1531_v30 }
 0x360   :  { %v1518_v53 = vunpack.i.h.bf16 %v1516_v45  ;;  %v1517_v18 = vunpack.i.l.bf16 %v1516_v45  ;;  %v807_v45 = vpop.permute.xlu0 %806 }
 0x361   :  { %1301 = vmatprep.subr.bf16.mxu0 %v1300_v44  ;;  %v810_v10 = vsel %vm203_vm6, %v1498_v59, %v1532_v17  ;;  %v812_v58 = vsel %vm203_vm6, %v1533_v32, %v807_v45  ;;  %v820_v59 = vsel %vm203_vm6, %v807_v45, %v2039_v51 }
 0x362   :  { %1303 = vmatpush1.bf16.msra.mxu0 %v1302_v5  ;;  %v736_v4 = vsel %vm136_vm1, %v1483_v40, %v1517_v18  ;;  %v738_v0 = vsel %vm136_vm1, %v1518_v53, %v1482_v33  ;;  %v737_v16 = vsel %vm136_vm1, %v1517_v18, %v1518_v53 }
 0x363   :  { %v2073_v62 = vpop.permute.xlu1 %825  ;;  %v1304_v35 = vpack.c.bf16 %v736_v4, %v711_v43  ;;  %v1320_v33 = vpack.c.bf16 %v738_v0, %v713_v2  ;;  %v1322_v22 = vpack.c.bf16 %v737_v16, %v712_v7 }
 0x364   :  { %v834_v48 = vsel %vm224_vm8, %v824_v37, %v2073_v62  ;;  %v770_v37 = vsel %vm156_vm5, %v757_v42, %v2021_v38  ;;  %v830_v53 = vpop.permute.xlu0 %829 }
 0x365   :  { %866 = vmatprep.subr.mxu1 %v834_v48  ;;  %1305 = vmatprep.subr.bf16.mxu0 %v1304_v35  ;;  %v1324_v3 = vpack.c.bf16 %v770_v37, %v1896_v50 }
 0x366   :  { %867 = vmatpush1.msra.mxu1 %v833_v23  ;;  %1307 = vmatpush1.bf16.msra.mxu0 %v1306_v54 }
 0x367   :  { %v1521_v31 = vpop.permute.xlu1 %1520  ;;  %1257 = vmatmul.mubr.msk.f32.vlgmr.msra.gmra.mrb[2].mxu1 %vm846_vm4, %v2080_v15  ;;  %1317 = vmatprep.subr.bf16.mxu1 %v1316_v24 }
 0x368   :  { %v1523_v14 = vunpack.i.h.bf16 %v1521_v31  ;;  %v1522_v11 = vunpack.i.l.bf16 %v1521_v31  ;;  %1319 = vmatpush1.bf16.msra.mxu1 %v1318_v25  ;;  %1056 = vmatprep.mubr.f32.mxu1 %v1548_v12 }
 0x369   :  { %1321 = vmatprep.subr.bf16.mxu1 %v1320_v33 }
 0x36a   :  { %v760_v40 = vsel %vm156_vm5, %v1488_v29, %v1522_v11  ;;  %v761_v1 = vsel %vm156_vm5, %v1522_v11, %v1523_v14  ;;  %v762_v38 = vsel %vm156_vm5, %v1523_v14, %v757_v42 }
 0x36b   :  { %v1310_v21 = vpack.c.bf16 %v760_v40, %v1893_v49  ;;  %v1526_v36 = vpop.permute.xlu1 %1525  ;;  %v1308_v12 = vpack.c.bf16 %v761_v1, %v1913_v60  ;;  %v1326_v29 = vpack.c.bf16 %v762_v38, %v1916_v6  ;;  %v811_v60 = vsel %vm203_vm6, %v1532_v17, %v1533_v32 }
 0x36c   :  { %v1528_v13 = vunpack.i.h.bf16 %v1526_v36  ;;  %v1527_v39 = vunpack.i.l.bf16 %v1526_v36  ;;  %1323 = vmatpush1.bf16.msra.mxu1 %v1322_v22 }
 0x36d   :  { %1309 = vmatprep.subr.bf16.mxu0 %v1308_v12  ;;  %1325 = vmatprep.subr.bf16.mxu1 %v1324_v3 }
 0x36e   :  { %v785_v50 = vsel %vm177_vm7, %v1493_v56, %v1527_v39  ;;  %1311 = vmatpush1.bf16.msra.mxu0 %v1310_v21  ;;  %v786_v49 = vsel %vm177_vm7, %v1527_v39, %v1528_v13 }
 0x36f   :  { %v1314_v44 = vpack.c.bf16 %v810_v10, %v785_v50  ;;  %v782_v5 = vpop.permute.xlu1 %781  ;;  %v1312_v8 = vpack.c.bf16 %v811_v60, %v786_v49 }
 0x370   :  { %v787_v42 = vsel %vm177_vm7, %v1528_v13, %v782_v5  ;;  %v795_v6 = vsel %vm177_vm7, %v782_v5, %v1985_v20  ;;  %1327 = vmatpush1.bf16.msra.mxu1 %v1326_v29 }
 0x371   :  { %v1328_v61 = vpack.c.bf16 %v820_v59, %v795_v6  ;;  %v1330_v56 = vpack.c.bf16 %v812_v58, %v787_v42  ;;  %1313 = vmatprep.subr.bf16.mxu0 %v1312_v8 }
 0x372   :  { %1315 = vmatpush1.bf16.msra.mxu0 %v1314_v44 }
 0x373   :  { %v828_v18 = vpop.permute.xlu1 %827  ;;  %1329 = vmatprep.subr.bf16.mxu1 %v1328_v61 }
 0x374   :  { %v835_v63 = vsel %vm224_vm8, %v2073_v62, %v828_v18  ;;  %1331 = vmatpush1.bf16.msra.mxu1 %v1330_v56  ;;  %v836_v57 = vsel %vm224_vm8, %v828_v18, %v830_v53 }
 0x375   :  { %937 = vmatprep.subr.mxu0 %v836_v57 }
 0x376   :  { %938 = vmatpush1.msra.mxu0 %v835_v63 }
 0x377   :  { %v832_v51 = vpop.permute.xlu1 %831  ;;  %1258 = vmatmul.mubr.msk.f32.vlgmr.msra.gmra.mrb[4].mxu0 %vm846_vm4, %v2080_v15 }
 0x378   :  { %v837_v20 = vsel %vm224_vm8, %v830_v53, %v832_v51  ;;  %v845_v43 = vsel %vm224_vm8, %v832_v51, %v2047_v46 }
 0x379   :  { %1008 = vmatprep.subr.mxu1 %v845_v43 }
 0x37a   :  { %1009 = vmatpush1.msra.mxu1 %v837_v20 }
 0x37b   :  { %1259 = vmatmul.mubr.msk.f32.vlgmr.msra.gmra.mrb[4].mxu1 %vm846_vm4, %v2080_v15 }
 0x43a   :  { %v916_v4 = vpop.f32.mrb[2].mxu1 }
 0x43b   :  { %v1063_v9 = vmul.f32 %v916_v4, %v1854_v55  ;;  %v918_v28 = vpop.f32.mrb[3].mxu1 }
 0x43c   :  { %v1064_v41 = vmul.f32 %v918_v28, %v1856_v34 }
 0x43d   :  { %v1077_v62 = vmul.f32 %v1063_v9, %v916_v4 }
 0x43e   :  { %v1069_v35 = vadd.f32 %v1064_v41, %v1063_v9  ;;  %v1078_v54 = vmul.f32 %v1064_v41, %v918_v28 }
 0x440   :  { %v1083_v48 = vadd.f32 %v1078_v54, %v1077_v62 }
 0x44a   :  { %v987_v19 = vpop.f32.mrb[4].mxu0 }
 0x44b   :  { %v1065_v0 = vmul.f32 %v987_v19, %v1860_v52  ;;  %v989_v27 = vpop.f32.mrb[5].mxu0 }
 0x44c   :  { %v1066_v46 = vmul.f32 %v989_v27, %v1854_v55 }
 0x44d   :  { %v1070_v23 = vadd.f32 %v1069_v35, %v1065_v0  ;;  %v1079_v24 = vmul.f32 %v1065_v0, %v987_v19 }
 0x44e   :  { %v1080_v30 = vmul.f32 %v1066_v46, %v989_v27  ;;  %v1058_v15 = vpop.f32.mrb[4].mxu1 }
 0x44f   :  { %v1084_v25 = vadd.f32 %v1083_v48, %v1079_v24  ;;  %v1071_v2 = vadd.f32 %v1070_v23, %v1066_v46  ;;  %v1067_v16 = vmul.f32 %v1058_v15, %v1856_v34  ;;  %v1060_v31 = vpop.f32.mrb[5].mxu1 }
 0x450   :  { %v1068_v33 = vmul.f32 %v1060_v31, %v1860_v52 }
 0x451   :  { %v1085_v37 = vadd.f32 %v1084_v25, %v1080_v30  ;;  %v1081_v14 = vmul.f32 %v1067_v16, %v1058_v15  ;;  %v1072_v11 = vadd.f32 %v1071_v2, %v1067_v16 }
 0x452   :  { %v1082_v7 = vmul.f32 %v1068_v33, %v1060_v31 }
 0x453   :  { %v1073_v17 = vadd.f32 %v1072_v11, %v1068_v33  ;;  %v1086_v32 = vadd.f32 %v1085_v37, %v1081_v14 }
 0x455   :  { %1074 = vadd.xlane.f32.xlu0 %v1073_v17  ;;  %v1087_v22 = vadd.f32 %v1086_v32, %v1082_v7 }
 0x457   :  { %1088 = vadd.xlane.f32.xlu1 %v1087_v22 }
 0x4e2   :  { %v1075_v55 = vpop.xlane.xlu0 %1074 }
 0x4e3   :  { %v1076_v40 = vmul.f32 0.001953125, %v1075_v55 }
 0x4e4   :  { %v1089_v1 = vpop.xlane.xlu1 %1088 }
 0x4e5   :  { %v1091_v3 = vmul.f32 %v1076_v40, %v1076_v40  ;;  %v1090_v38 = vmul.f32 0.001953125, %v1089_v1 }
 0x4e7   :  { %v1092_v21 = vsub.f32 %v1090_v38, %v1091_v3 }
 0x4e9   :  { %v1093_v36 = vmax.f32 %v1092_v21, 0.0 }
 0x4eb   :  { %v1094_v34 = vadd.f32 1e-05, %v1093_v36 }
 0x4ed   :  { %1539 = vrsqrt.f32 %v1094_v34 }
 0x4f7   :  { %v1540_v12 = vpop.eup %1539 }
 0x4f8   :  { %v1096_v52 = vmul.f32 %v1540_v12, %v1877_v47 }
 0x4fa   :  { %1101 = vperm.xlu0 %1442, %v1096_v52   ;;  %v1097_v13 = vmul.f32 %v1096_v52, %v1076_v40 }
 0x4fc   :  { %v1098_v39 = vsub.f32 %v1883_v26, %v1097_v13 }
 0x4fe   :  { %1112 = vperm.xlu1 %1443, %v1098_v39  }
 0x579   :  { %v1102_v10 = vpop.permute.xlu0 %1101 }
 0x57a   :  { %v1105_v45 = vmul.f32 %v1102_v10, %v918_v28  ;;  %v1104_v29 = vmul.f32 %v1102_v10, %v916_v4  ;;  %v1107_v50 = vmul.f32 %v1102_v10, %v989_v27  ;;  %v1106_v49 = vmul.f32 %v1102_v10, %v987_v19 }
 0x57b   :  { %v1109_v59 = vmul.f32 %v1102_v10, %v1060_v31  ;;  %v1108_v42 = vmul.f32 %v1102_v10, %v1058_v15 }
 0x57d   :  { %v1113_v60 = vpop.permute.xlu1 %1112 }
 0x57e   :  { %v1116_v44 = vadd.f32 %v1113_v60, %v1105_v45  ;;  %v1115_v5 = vadd.f32 %v1113_v60, %v1104_v29  ;;  %v1118_v8 = vadd.f32 %v1113_v60, %v1107_v50  ;;  %v1117_v58 = vadd.f32 %v1113_v60, %v1106_v49 }
 0x57f   :  { %v1120_v61 = vadd.f32 %v1113_v60, %v1109_v59  ;;  %v1119_v56 = vadd.f32 %v1113_v60, %v1108_v42 }
 0x580   :  { %vm1122_vm0 = vcmp.ge.f32.partialorder %v1116_v44, 0.0  ;;  %v1128_v6 = vmul.f32 0.1, %v1116_v44  ;;  %vm1121_vm1 = vcmp.ge.f32.partialorder %v1115_v5, 0.0  ;;  %v1127_v47 = vmul.f32 0.1, %v1115_v5 }
 0x581   :  { %v1130_v18 = vmul.f32 0.1, %v1118_v8  ;;  %v1129_v63 = vmul.f32 0.1, %v1117_v58  ;;  %vm1124_vm2 = vcmp.ge.f32.partialorder %v1118_v8, 0.0  ;;  %vm1123_vm3 = vcmp.ge.f32.partialorder %v1117_v58, 0.0 }
 0x582   :  { %v2142_v26 = vsel %vm1122_vm0, %v1116_v44, %v1128_v6  ;;  %v1133_v53 = vsel %vm1121_vm1, %v1115_v5, %v1127_v47  ;;  %v1132_v20 = vmul.f32 0.1, %v1120_v61  ;;  %v1131_v43 = vmul.f32 0.1, %v1119_v56 }
 0x583   :  { %1147 = vrot.lane.b32.xlu1 %v2142_v26, %s1546_s7  ;;  %1145 = vrot.lane.b32.xlu0 %v1133_v53, %s1546_s7  ;;  %v2147_v57 = vsel %vm1124_vm2, %v1118_v8, %v1130_v18  ;;  %v2149_v51 = vsel %vm1123_vm3, %v1117_v58, %v1129_v63  ;;  %vm1126_vm7 = vcmp.ge.f32.partialorder %v1120_v61, 0.0  ;;  %vm1125_vm9 = vcmp.ge.f32.partialorder %v1119_v56, 0.0 }
 0x584   :  { %v2155_v4 = vsel %vm1126_vm7, %v1120_v61, %v1132_v20  ;;  %v2157_v9 = vsel %vm1125_vm9, %v1119_v56, %v1131_v43 }
 0x587   :  { %1151 = vrot.lane.b32.xlu1 %v2147_v57, %s1546_s7  ;;  %1149 = vrot.lane.b32.xlu0 %v2149_v51, %s1546_s7 }
 0x58b   :  { %1155 = vrot.lane.b32.xlu1 %v2155_v4, %s1546_s7  ;;  %1153 = vrot.lane.b32.xlu0 %v2157_v9, %s1546_s7 }
 0x58f   :  { %1178 = vrot.lane.b32.xlu1 %v2142_v26, %s1545_s30  ;;  %1176 = vrot.lane.b32.xlu0 %v1133_v53, %s1545_s30 }
 0x593   :  { %1182 = vrot.lane.b32.xlu1 %v2147_v57, %s1545_s30  ;;  %1180 = vrot.lane.b32.xlu0 %v2149_v51, %s1545_s30 }
 0x597   :  { %1186 = vrot.lane.b32.xlu1 %v2155_v4, %s1545_s30  ;;  %1184 = vrot.lane.b32.xlu0 %v2157_v9, %s1545_s30 }
 0x59b   :  { %1203 = vrot.lane.b32.xlu1 %v2142_v26, %s1549_s9  ;;  %1201 = vrot.lane.b32.xlu0 %v1133_v53, %s1549_s9 }
 0x59f   :  { %1207 = vrot.lane.b32.xlu1 %v2147_v57, %s1549_s9  ;;  %1205 = vrot.lane.b32.xlu0 %v2149_v51, %s1549_s9 }
 0x5a3   :  { %1211 = vrot.lane.b32.xlu1 %v2155_v4, %s1549_s9  ;;  %1209 = vrot.lane.b32.xlu0 %v2157_v9, %s1549_s9 }
 0x5f5   :  { %v1148_v28 = vpop.permute.xlu1 %1147  ;;  %v1146_v41 = vpop.permute.xlu0 %1145 }
 0x5f6   :  { %v1157_v30 = vsel %vm156_vm5, %v1146_v41, %v1148_v28 }
 0x5f7   :  { %v1170_v31 = vmax.f32 %v1133_v53, %v1157_v30 }
 0x5f9   :  { %v1152_v62 = vpop.permute.xlu1 %1151  ;;  %v1150_v35 = vpop.permute.xlu0 %1149 }
 0x5fa   :  { %v1158_v37 = vsel %vm156_vm5, %v1148_v28, %v1150_v35  ;;  %v1159_v14 = vsel %vm156_vm5, %v1150_v35, %v1152_v62 }
 0x5fb   :  { %v1171_v38 = vmax.f32 %v2142_v26, %v1158_v37  ;;  %v1172_v21 = vmax.f32 %v2149_v51, %v1159_v14 }
 0x5fd   :  { %v1156_v54 = vpop.permute.xlu1 %1155  ;;  %v1154_v48 = vpop.permute.xlu0 %1153 }
 0x5fe   :  { %v1169_v11 = vsel %vm156_vm5, %v1156_v54, %v1146_v41  ;;  %v1160_v7 = vsel %vm156_vm5, %v1152_v62, %v1154_v48  ;;  %v1161_v52 = vsel %vm156_vm5, %v1154_v48, %v1156_v54 }
 0x5ff   :  { %v1175_v12 = vmax.f32 %v2155_v4, %v1169_v11  ;;  %v1173_v13 = vmax.f32 %v2147_v57, %v1160_v7  ;;  %v1174_v58 = vmax.f32 %v2157_v9, %v1161_v52 }
 0x601   :  { %v1179_v19 = vpop.permute.xlu1 %1178  ;;  %v1177_v0 = vpop.permute.xlu0 %1176 }
 0x602   :  { %v1188_v2 = vsel %vm203_vm6, %v1177_v0, %v1179_v19 }
 0x605   :  { %v1183_v27 = vpop.permute.xlu1 %1182  ;;  %v1181_v46 = vpop.permute.xlu0 %1180 }
 0x606   :  { %v1189_v55 = vsel %vm203_vm6, %v1179_v19, %v1181_v46  ;;  %v1190_v40 = vsel %vm203_vm6, %v1181_v46, %v1183_v27 }
 0x609   :  { %v1187_v23 = vpop.permute.xlu1 %1186  ;;  %v1185_v24 = vpop.permute.xlu0 %1184 }
 0x60a   :  { %v1200_v39 = vsel %vm203_vm6, %v1187_v23, %v1177_v0  ;;  %v1191_v10 = vsel %vm203_vm6, %v1183_v27, %v1185_v24  ;;  %v1192_v60 = vsel %vm203_vm6, %v1185_v24, %v1187_v23 }
 0x60d   :  { %v1204_v15 = vpop.permute.xlu1 %1203  ;;  %v1202_v25 = vpop.permute.xlu0 %1201 }
 0x60e   :  { %v1213_v16 = vsel %vm224_vm8, %v1202_v25, %v1204_v15 }
 0x60f   :  { %v1226_v33 = vmax.f32 %v1188_v2, %v1213_v16 }
 0x611   :  { %v1232_v17 = vmax.f32 %v1170_v31, %v1226_v33  ;;  %v1208_v32 = vpop.permute.xlu1 %1207  ;;  %v1206_v22 = vpop.permute.xlu0 %1205 }
 0x612   :  { %v1214_v1 = vsel %vm224_vm8, %v1204_v15, %v1206_v22  ;;  %v1215_v3 = vsel %vm224_vm8, %v1206_v22, %v1208_v32 }
 0x613   :  { %1238 = vst [vmem:[%s2232_s6] sm:$0xff] %v1232_v17  ;;  %v1227_v36 = vmax.f32 %v1189_v55, %v1214_v1  ;;  %v1228_v34 = vmax.f32 %v1190_v40, %v1215_v3 }
 0x615   :  { %v1233_v45 = vmax.f32 %v1171_v38, %v1227_v36  ;;  %v1234_v29 = vmax.f32 %v1172_v21, %v1228_v34  ;;  %v1212_v50 = vpop.permute.xlu1 %1211  ;;  %v1210_v49 = vpop.permute.xlu0 %1209 }
 0x616   :  { %v1225_v44 = vsel %vm224_vm8, %v1212_v50, %v1202_v25  ;;  %v1216_v5 = vsel %vm224_vm8, %v1208_v32, %v1210_v49  ;;  %v1217_v8 = vsel %vm224_vm8, %v1210_v49, %v1212_v50 }
 0x617   :  { %1239 = vst [vmem:[%s2232_s6 + $0x8] sm:$0xff] %v1233_v45  ;;  %1240 = vst [vmem:[%s2232_s6 + $0x10] sm:$0xff] %v1234_v29  ;;  %v1231_v59 = vmax.f32 %v1200_v39, %v1225_v44  ;;  %v1229_v42 = vmax.f32 %v1191_v10, %v1216_v5  ;;  %v1230_v6 = vmax.f32 %v1192_v60, %v1217_v8 }
 0x619   :  { %v1237_v47 = vmax.f32 %v1175_v12, %v1231_v59  ;;  %v1235_v61 = vmax.f32 %v1173_v13, %v1229_v42  ;;  %v1236_v56 = vmax.f32 %v1174_v58, %v1230_v6 }
 0x61b   :  { %1243 = vst [vmem:[%s2232_s6 + $0x28] sm:$0xff] %v1237_v47  ;;  %1241 = vst [vmem:[%s2232_s6 + $0x18] sm:$0xff] %v1235_v61 }
 0x61c   :  { %1242 = vst [vmem:[%s2232_s6 + $0x20] sm:$0xff] %v1236_v56 }

</bundles_post_ra>
